<compile_context>
chip_gen: v6e
topology: v6e:2x2x1
jax: 0.10.0
libtpu: 0.0.40
codegen_flags: <defaults>
</compile_context>

<pallas_src>
import jax
import jax.numpy as jnp
from jax import lax
from jax.experimental import pallas as pl
from jax.experimental.pallas import tpu as pltpu


def _round_up(x, m):
    return ((x + m - 1) // m) * m


def gru_kernel(x_ref, w_i_ref, w_h_ref, b_i_ref, b_hn_ref,
               out_ref, gi_ref, h_ref):
    """GRU forward for one (batch-tile, time-chunk) grid cell.

    x_ref    : (1, tc*bb, Hp) bf16   time-major rows within the tile (row = t*bb + b)
    w_i_ref  : (Hp, 3Hp) bf16        fused, transposed input-to-hidden weights [r|z|n]
    w_h_ref  : (Hp, 3Hp) bf16        fused, transposed hidden-to-hidden weights [r|z|n]
    b_i_ref  : (1, 3Hp) f32          fused biases [b_ir+b_hr | b_iz+b_hz | b_in]
    b_hn_ref : (1, Hp)  f32          hidden bias of the n gate (kept separate: r * gh_n)
    out_ref  : (1, tc*bb, Hp) bf16   per-step hidden states for this chunk
    gi_ref   : (tc*bb, 3Hp) bf16     scratch: fused input projections for the chunk
    h_ref    : (bb, Hp)  f32         scratch: hidden-state carry across time chunks
    """
    Hp = out_ref.shape[2]
    bb = h_ref.shape[0]
    t_chunk = out_ref.shape[1] // bb

    # First time-chunk of each batch tile: reset the carried hidden state.
    @pl.when(pl.program_id(1) == 0)
    def _():
        h_ref[...] = jnp.zeros_like(h_ref)

    # Fused input projection for every timestep in the chunk: ONE MXU pass.
    x = x_ref[0]                                                    # (tc*bb, Hp) bf16
    gi = jnp.dot(x, w_i_ref[...], preferred_element_type=jnp.float32)
    gi_ref[...] = (gi + b_i_ref[...]).astype(gi_ref.dtype)          # bf16 scratch

    # Loop invariants hoisted (JAX does not CSE broadcasts inside unrolled loops).
    w_h = w_h_ref[...]
    b_hn = jnp.broadcast_to(b_hn_ref[...], (bb, Hp)).astype(jnp.float32)

    def gru_step(row, h_prev):
        # row is a multiple of bb (>= 8) -> sublane-aligned, unmasked slab access.
        gi_blk = gi_ref[pl.ds(row, bb), :]                           # (bb, 3Hp) bf16
        gh = jnp.dot(h_prev.astype(jnp.bfloat16), w_h,
                     preferred_element_type=jnp.float32)             # (bb, 3Hp) f32
        # Hp % 128 == 0 -> these lane slices are tile-aligned (no cross-lane shuffles).
        r = jax.nn.sigmoid(gi_blk[:, :Hp] + gh[:, :Hp])
        z = jax.nn.sigmoid(gi_blk[:, Hp:2 * Hp] + gh[:, Hp:2 * Hp])
        n = jnp.tanh(gi_blk[:, 2 * Hp:] + r * (gh[:, 2 * Hp:] + b_hn))
        return (1.0 - z) * n + z * h_prev

    h0 = h_ref[...]

    if t_chunk <= 16:
        # Tiny chunks: full unroll keeps one basic block for the LLO scheduler.
        h = h0
        for t in range(t_chunk):
            h = gru_step(t * bb, h)
            out_ref[0, pl.ds(t * bb, bb), :] = h.astype(out_ref.dtype)
    else:
        def body(t, h_prev):
            row = pl.multiple_of(t * bb, bb)
            h_new = gru_step(row, h_prev)
            out_ref[0, pl.ds(row, bb), :] = h_new.astype(out_ref.dtype)
            return h_new

        h = lax.fori_loop(0, t_chunk, body, h0, unroll=4)

    h_ref[...] = h


def _chunk_vmem_bytes(t_chunk, bb, Hp):
    """Rough per-grid-cell VMEM estimate (double-buffered I/O + scratch + weights)."""
    rows = t_chunk * bb
    x_io = 2 * rows * Hp * 2            # bf16 input block x2 (pipeline)
    out_io = 2 * rows * Hp * 2          # bf16 output block x2 (pipeline)
    gi = rows * 3 * Hp * 2              # bf16 scratch
    w = 2 * Hp * 3 * Hp * 2             # fused w_i + w_h (bf16)
    h = bb * Hp * 4                     # f32 carry
    b = 4 * Hp * 4 * 2                  # biases
    return x_io + out_io + gi + w + h + b


def encoder_forward(ids, emb_table, w_ih, w_hh, b_ih, b_hh,
                    *, batch_tile=None, t_chunk=None,
                    vmem_budget_bytes=24 * 1024 * 1024):
    """Encoder.forward: returns (output (B, T, H) bf16, hidden (1, B, H) f32)."""
    B, T = ids.shape
    V, H = emb_table.shape
    Hp = _round_up(H, 128)                       # lane-dense hidden dim

    # Batch tile: as many MXU rows as the batch supports, capped at 128 (v5e MXU).
    if batch_tile is None:
        batch_tile = max(8, min(128, _round_up(B, 8)))
    bb = _round_up(batch_tile, 8)
    n_bt = pl.cdiv(B, bb)
    B_pad = n_bt * bb

    # Time chunk: as large as the VMEM budget allows (bounded VMEM at production T).
    if t_chunk is None:
        t_chunk = min(T, 256)
        while t_chunk > 1 and _chunk_vmem_bytes(t_chunk, bb, Hp) > vmem_budget_bytes:
            t_chunk = max(1, t_chunk // 2)
    n_tc = pl.cdiv(T, t_chunk)
    T_pad = n_tc * t_chunk

    # ---- XLA glue: embedding gather directly into the time-major tile layout ----
    # TODO(synk): dropout = identity (eval mode); gather fusion into the kernel is the
    #             remaining HBM-traffic win at production sizes.
    ids_pad = jnp.pad(ids, ((0, B_pad - B), (0, T_pad - T)))          # pad with id 0
    ids_tm = ids_pad.reshape(n_bt, bb, T_pad).transpose(0, 2, 1)      # (n_bt, T_pad, bb)
    emb_pad = jnp.pad(emb_table, ((0, 0), (0, Hp - H)))               # zero lane padding
    x = emb_pad[ids_tm].astype(jnp.bfloat16)                          # (n_bt, T_pad, bb, Hp)
    x = x.reshape(n_bt, T_pad * bb, Hp)

    # ---- fused, transposed, lane-padded weights / biases -------------------------
    def gate_w(w, g):                                                 # (H,H) -> (Hp,Hp), W.T
        blk = w[g * H:(g + 1) * H, :].T
        return jnp.pad(blk, ((0, Hp - H), (0, Hp - H)))

    def gate_b(v, g):                                                 # (H,) -> (Hp,)
        return jnp.pad(v[g * H:(g + 1) * H], (0, Hp - H))

    w_i = jnp.concatenate([gate_w(w_ih, 0), gate_w(w_ih, 1), gate_w(w_ih, 2)],
                          axis=1).astype(jnp.bfloat16)                # (Hp, 3Hp)
    w_h = jnp.concatenate([gate_w(w_hh, 0), gate_w(w_hh, 1), gate_w(w_hh, 2)],
                          axis=1).astype(jnp.bfloat16)                # (Hp, 3Hp)
    b_i = jnp.concatenate([gate_b(b_ih, 0) + gate_b(b_hh, 0),
                           gate_b(b_ih, 1) + gate_b(b_hh, 1),
                           gate_b(b_ih, 2)]).reshape(1, 3 * Hp).astype(jnp.float32)
    b_hn = gate_b(b_hh, 2).reshape(1, Hp).astype(jnp.float32)

    # ---- Pallas call: grid = (batch tiles [parallel], time chunks [arbitrary]) ---
    rows = t_chunk * bb
    in_specs = [
        pl.BlockSpec((1, rows, Hp), lambda bt, tc: (bt, tc, 0)),      # x chunk
        pl.BlockSpec((Hp, 3 * Hp), lambda bt, tc: (0, 0)),            # w_i (fused)
        pl.BlockSpec((Hp, 3 * Hp), lambda bt, tc: (0, 0)),            # w_h (fused)
        pl.BlockSpec((1, 3 * Hp), lambda bt, tc: (0, 0)),             # b_i (fused)
        pl.BlockSpec((1, Hp), lambda bt, tc: (0, 0)),                 # b_hn
    ]
    out_specs = pl.BlockSpec((1, rows, Hp), lambda bt, tc: (bt, tc, 0))
    out_shape = jax.ShapeDtypeStruct((n_bt, T_pad * bb, Hp), jnp.bfloat16)

    vmem_limit = int(min(64 * 1024 * 1024,
                         max(16 * 1024 * 1024,
                             2 * _chunk_vmem_bytes(t_chunk, bb, Hp))))

    out_blk = pl.pallas_call(
        gru_kernel,
        grid=(n_bt, n_tc),
        in_specs=in_specs,
        out_specs=out_specs,
        out_shape=out_shape,
        scratch_shapes=[
            pltpu.VMEM((rows, 3 * Hp), jnp.bfloat16),   # gi: fused input projections
            pltpu.VMEM((bb, Hp), jnp.float32),          # hidden-state carry (f32)
        ],
        compiler_params=pltpu.CompilerParams(
            dimension_semantics=("parallel", "arbitrary"),
            vmem_limit_bytes=vmem_limit),
    )(x, w_i, w_h, b_i, b_hn)

    # ---- XLA glue: undo the tile layout / padding ---------------------------------
    out4 = out_blk.reshape(n_bt, T_pad, bb, Hp)
    output = out4.transpose(0, 2, 1, 3).reshape(B_pad, T_pad, Hp)[:B, :T, :H]  # bf16
    hidden = output[:, T - 1, :].astype(jnp.float32)[None]                     # (1, B, H)
    return output, hidden


def reference_forward(ids, emb_table, w_ih, w_hh, b_ih, b_hh):
    """Pure-JAX f32 reference matching torch.nn.GRU semantics."""
    x = emb_table[ids].astype(jnp.float32)
    B, T, H = x.shape
    h = jnp.zeros((B, H), jnp.float32)
    outs = []
    for t in range(T):
        gi = x[:, t, :] @ w_ih.T + b_ih
        gh = h @ w_hh.T + b_hh
        r = jax.nn.sigmoid(gi[:, :H] + gh[:, :H])
        z = jax.nn.sigmoid(gi[:, H:2 * H] + gh[:, H:2 * H])
        n = jnp.tanh(gi[:, 2 * H:] + r * gh[:, 2 * H:])
        h = (1.0 - z) * n + z * h
        outs.append(h)
    return jnp.stack(outs, axis=1), h[None]


if __name__ == "__main__":
    input_size = 16   # vocab
    hidden_size = 32  # H
    batch = 2
    seq = 8

    key = jax.random.PRNGKey(0)
    k_emb, k_wih, k_whh, k_bih, k_bhh, k_ids = jax.random.split(key, 6)

    H = hidden_size
    bound = 1.0 / (H ** 0.5)
    emb_table = jax.random.normal(k_emb, (input_size, H), jnp.float32)
    w_ih = jax.random.uniform(k_wih, (3 * H, H), jnp.float32, -bound, bound)
    w_hh = jax.random.uniform(k_whh, (3 * H, H), jnp.float32, -bound, bound)
    b_ih = jax.random.uniform(k_bih, (3 * H,), jnp.float32, -bound, bound)
    b_hh = jax.random.uniform(k_bhh, (3 * H,), jnp.float32, -bound, bound)

    ids = jax.random.randint(k_ids, (batch, seq), 0, input_size, jnp.int32)

    out, hid = encoder_forward(ids, emb_table, w_ih, w_hh, b_ih, b_hh)
    out = jax.block_until_ready(out)
    hid = jax.block_until_ready(hid)

    out_ref, hid_ref = reference_forward(ids, emb_table, w_ih, w_hh, b_ih, b_hh)
    assert out.shape == (batch, seq, H) and hid.shape == (1, batch, H)
    # bf16 MXU inputs + bf16 gi / output storage (f32 state & gate math) -> relaxed tol.
    assert jnp.allclose(out.astype(jnp.float32), out_ref, rtol=3e-2, atol=3e-2), \
        "output mismatch vs reference"
    assert jnp.allclose(hid, hid_ref, rtol=3e-2, atol=3e-2), \
        "hidden mismatch vs reference"

    print("KERNEL_OK")
</pallas_src>

<mosaic_0001>
module attributes {stable_mosaic.version = 11 : i64} {
  func.func @gru_kernel(%arg0: i32, %arg1: i32, %arg2: memref<1x64x128xbf16, #tpu.memory_space<vmem>>, %arg3: memref<128x384xbf16, #tpu.memory_space<vmem>>, %arg4: memref<128x384xbf16, #tpu.memory_space<vmem>>, %arg5: memref<1x384xf32, #tpu.memory_space<vmem>>, %arg6: memref<1x128xf32, #tpu.memory_space<vmem>>, %arg7: memref<1x64x128xbf16, #tpu.memory_space<vmem>>, %arg8: memref<64x384xbf16, #tpu.memory_space<vmem>>, %arg9: memref<8x128xf32, #tpu.memory_space<vmem>>) attributes {dimension_semantics = [#tpu.dimension_semantics<parallel>, #tpu.dimension_semantics<arbitrary>], iteration_bounds = array<i64: 1, 1>, scalar_prefetch = 0 : i64, scratch_operands = 2 : i64, tpu.core_type = #tpu.core_type<tc>, window_params = [{transform_indices = @transform_0, window_bounds = array<i64: 1, 64, 128>}, {pipeline_mode = #tpu.pipeline_mode<synchronous>, transform_indices = @transform_1, window_bounds = array<i64: 128, 384>}, {pipeline_mode = #tpu.pipeline_mode<synchronous>, transform_indices = @transform_2, window_bounds = array<i64: 128, 384>}, {pipeline_mode = #tpu.pipeline_mode<synchronous>, transform_indices = @transform_3, window_bounds = array<i64: 1, 384>}, {pipeline_mode = #tpu.pipeline_mode<synchronous>, transform_indices = @transform_4, window_bounds = array<i64: 1, 128>}, {transform_indices = @transform_5, window_bounds = array<i64: 1, 64, 128>}]} {
    %c0_i32 = arith.constant 0 : i32
    %0 = arith.cmpi eq, %arg1, %c0_i32 : i32
    %1 = arith.extui %0 : i1 to i32
    %c0_i32_0 = arith.constant 0 : i32
    %2 = arith.cmpi ne, %1, %c0_i32_0 : i32
    scf.if %2 {
      %cst_82 = arith.constant 0.000000e+00 : f32
      %314 = vector.broadcast %cst_82 : f32 to vector<8x128xf32>
      %c0_83 = arith.constant 0 : index
      %c0_84 = arith.constant 0 : index
      %315 = vector.load %arg9[%c0_83, %c0_84] : memref<8x128xf32, #tpu.memory_space<vmem>>, vector<8x128xf32>
      tpu.vector_store %arg9[%c0_83, %c0_84], %314 {strides = array<i32>} : memref<8x128xf32, #tpu.memory_space<vmem>>, vector<8x128xf32>,
    } else {
    }
    %c0 = arith.constant 0 : index
    %c0_1 = arith.constant 0 : index
    %c0_2 = arith.constant 0 : index
    %3 = vector.load %arg2[%c0, %c0_1, %c0_2] : memref<1x64x128xbf16, #tpu.memory_space<vmem>>, vector<1x64x128xbf16>
    %4 = vector.shape_cast %3 : vector<1x64x128xbf16> to vector<64x128xbf16>
    %c0_3 = arith.constant 0 : index
    %c0_4 = arith.constant 0 : index
    %5 = vector.load %arg3[%c0_3, %c0_4] : memref<128x384xbf16, #tpu.memory_space<vmem>>, vector<128x384xbf16>
    %cst = arith.constant dense<0.000000e+00> : vector<64x384xf32>
    %6 = tpu.matmul %4, %5, %cst {dimension_numbers = #tpu.dot_dimension_numbers<[1], [0], [0], [1], [0, 0, 1, 1], [], []>} : vector<64x128xbf16>, vector<128x384xbf16>, vector<64x384xf32> -> vector<64x384xf32>
    %c0_5 = arith.constant 0 : index
    %c0_6 = arith.constant 0 : index
    %7 = vector.load %arg5[%c0_5, %c0_6] : memref<1x384xf32, #tpu.memory_space<vmem>>, vector<1x384xf32>
    %8 = vector.broadcast %7 : vector<1x384xf32> to vector<64x384xf32>
    %9 = arith.addf %6, %8 : vector<64x384xf32>
    %10 = arith.truncf %9 : vector<64x384xf32> to vector<64x384xbf16>
    %c0_7 = arith.constant 0 : index
    %c0_8 = arith.constant 0 : index
    %11 = vector.load %arg8[%c0_7, %c0_8] : memref<64x384xbf16, #tpu.memory_space<vmem>>, vector<64x384xbf16>
    tpu.vector_store %arg8[%c0_7, %c0_8], %10 {strides = array<i32>} : memref<64x384xbf16, #tpu.memory_space<vmem>>, vector<64x384xbf16>,
    %c0_9 = arith.constant 0 : index
    %c0_10 = arith.constant 0 : index
    %12 = vector.load %arg4[%c0_9, %c0_10] : memref<128x384xbf16, #tpu.memory_space<vmem>>, vector<128x384xbf16>
    %c0_11 = arith.constant 0 : index
    %c0_12 = arith.constant 0 : index
    %13 = vector.load %arg6[%c0_11, %c0_12] : memref<1x128xf32, #tpu.memory_space<vmem>>, vector<1x128xf32>
    %14 = vector.shape_cast %13 : vector<1x128xf32> to vector<1x128xf32>
    %15 = vector.broadcast %14 : vector<1x128xf32> to vector<8x128xf32>
    %c0_13 = arith.constant 0 : index
    %c0_14 = arith.constant 0 : index
    %16 = vector.load %arg9[%c0_13, %c0_14] : memref<8x128xf32, #tpu.memory_space<vmem>>, vector<8x128xf32>
    %c0_15 = arith.constant 0 : index
    %c0_16 = arith.constant 0 : index
    %17 = vector.load %arg8[%c0_15, %c0_16] : memref<64x384xbf16, #tpu.memory_space<vmem>>, vector<8x384xbf16>
    %18 = arith.truncf %16 : vector<8x128xf32> to vector<8x128xbf16>
    %cst_17 = arith.constant dense<0.000000e+00> : vector<8x384xf32>
    %19 = tpu.matmul %18, %12, %cst_17 {dimension_numbers = #tpu.dot_dimension_numbers<[1], [0], [0], [1], [0, 0, 1, 1], [], []>} : vector<8x128xbf16>, vector<128x384xbf16>, vector<8x384xf32> -> vector<8x384xf32>
    %20 = vector.extract_strided_slice %17 {offsets = [0, 0], sizes = [8, 128], strides = [1, 1]} : vector<8x384xbf16> to vector<8x128xbf16>
    %21 = vector.extract_strided_slice %19 {offsets = [0, 0], sizes = [8, 128], strides = [1, 1]} : vector<8x384xf32> to vector<8x128xf32>
    %22 = arith.extf %20 : vector<8x128xbf16> to vector<8x128xf32>
    %23 = arith.addf %22, %21 : vector<8x128xf32>
    %24 = arith.negf %23 : vector<8x128xf32>
    %25 = math.exp %24 : vector<8x128xf32>
    %cst_18 = arith.constant 1.000000e+00 : f32
    %26 = vector.broadcast %cst_18 : f32 to vector<8x128xf32>
    %27 = arith.addf %26, %25 : vector<8x128xf32>
    %28 = arith.divf %26, %27 : vector<8x128xf32>
    %29 = vector.extract_strided_slice %17 {offsets = [0, 128], sizes = [8, 128], strides = [1, 1]} : vector<8x384xbf16> to vector<8x128xbf16>
    %30 = vector.extract_strided_slice %19 {offsets = [0, 128], sizes = [8, 128], strides = [1, 1]} : vector<8x384xf32> to vector<8x128xf32>
    %31 = arith.extf %29 : vector<8x128xbf16> to vector<8x128xf32>
    %32 = arith.addf %31, %30 : vector<8x128xf32>
    %33 = arith.negf %32 : vector<8x128xf32>
    %34 = math.exp %33 : vector<8x128xf32>
    %cst_19 = arith.constant 1.000000e+00 : f32
    %35 = vector.broadcast %cst_19 : f32 to vector<8x128xf32>
    %36 = arith.addf %35, %34 : vector<8x128xf32>
    %37 = arith.divf %35, %36 : vector<8x128xf32>
    %38 = vector.extract_strided_slice %17 {offsets = [0, 256], sizes = [8, 128], strides = [1, 1]} : vector<8x384xbf16> to vector<8x128xbf16>
    %39 = vector.extract_strided_slice %19 {offsets = [0, 256], sizes = [8, 128], strides = [1, 1]} : vector<8x384xf32> to vector<8x128xf32>
    %40 = arith.addf %39, %15 : vector<8x128xf32>
    %41 = arith.mulf %28, %40 : vector<8x128xf32>
    %42 = arith.extf %38 : vector<8x128xbf16> to vector<8x128xf32>
    %43 = arith.addf %42, %41 : vector<8x128xf32>
    %44 = math.tanh %43 : vector<8x128xf32>
    %cst_20 = arith.constant 1.000000e+00 : f32
    %45 = vector.broadcast %cst_20 : f32 to vector<8x128xf32>
    %46 = arith.subf %45, %37 : vector<8x128xf32>
    %47 = arith.mulf %46, %44 : vector<8x128xf32>
    %48 = arith.mulf %37, %16 : vector<8x128xf32>
    %49 = arith.addf %47, %48 : vector<8x128xf32>
    %50 = arith.truncf %49 : vector<8x128xf32> to vector<8x128xbf16>
    %c0_21 = arith.constant 0 : index
    %c0_22 = arith.constant 0 : index
    %c0_23 = arith.constant 0 : index
    %51 = vector.load %arg7[%c0_21, %c0_22, %c0_23] : memref<1x64x128xbf16, #tpu.memory_space<vmem>>, vector<1x8x128xbf16>
    %52 = vector.shape_cast %51 : vector<1x8x128xbf16> to vector<8x128xbf16>
    %53 = vector.shape_cast %50 : vector<8x128xbf16> to vector<1x8x128xbf16>
    tpu.vector_store %arg7[%c0_21, %c0_22, %c0_23], %53 {strides = array<i32>} : memref<1x64x128xbf16, #tpu.memory_space<vmem>>, vector<1x8x128xbf16>,
    %c8 = arith.constant 8 : index
    %c0_24 = arith.constant 0 : index
    %54 = vector.load %arg8[%c8, %c0_24] : memref<64x384xbf16, #tpu.memory_space<vmem>>, vector<8x384xbf16>
    %55 = arith.truncf %49 : vector<8x128xf32> to vector<8x128xbf16>
    %cst_25 = arith.constant dense<0.000000e+00> : vector<8x384xf32>
    %56 = tpu.matmul %55, %12, %cst_25 {dimension_numbers = #tpu.dot_dimension_numbers<[1], [0], [0], [1], [0, 0, 1, 1], [], []>} : vector<8x128xbf16>, vector<128x384xbf16>, vector<8x384xf32> -> vector<8x384xf32>
    %57 = vector.extract_strided_slice %54 {offsets = [0, 0], sizes = [8, 128], strides = [1, 1]} : vector<8x384xbf16> to vector<8x128xbf16>
    %58 = vector.extract_strided_slice %56 {offsets = [0, 0], sizes = [8, 128], strides = [1, 1]} : vector<8x384xf32> to vector<8x128xf32>
    %59 = arith.extf %57 : vector<8x128xbf16> to vector<8x128xf32>
    %60 = arith.addf %59, %58 : vector<8x128xf32>
    %61 = arith.negf %60 : vector<8x128xf32>
    %62 = math.exp %61 : vector<8x128xf32>
    %cst_26 = arith.constant 1.000000e+00 : f32
    %63 = vector.broadcast %cst_26 : f32 to vector<8x128xf32>
    %64 = arith.addf %63, %62 : vector<8x128xf32>
    %65 = arith.divf %63, %64 : vector<8x128xf32>
    %66 = vector.extract_strided_slice %54 {offsets = [0, 128], sizes = [8, 128], strides = [1, 1]} : vector<8x384xbf16> to vector<8x128xbf16>
    %67 = vector.extract_strided_slice %56 {offsets = [0, 128], sizes = [8, 128], strides = [1, 1]} : vector<8x384xf32> to vector<8x128xf32>
    %68 = arith.extf %66 : vector<8x128xbf16> to vector<8x128xf32>
    %69 = arith.addf %68, %67 : vector<8x128xf32>
    %70 = arith.negf %69 : vector<8x128xf32>
    %71 = math.exp %70 : vector<8x128xf32>
    %cst_27 = arith.constant 1.000000e+00 : f32
    %72 = vector.broadcast %cst_27 : f32 to vector<8x128xf32>
    %73 = arith.addf %72, %71 : vector<8x128xf32>
    %74 = arith.divf %72, %73 : vector<8x128xf32>
    %75 = vector.extract_strided_slice %54 {offsets = [0, 256], sizes = [8, 128], strides = [1, 1]} : vector<8x384xbf16> to vector<8x128xbf16>
    %76 = vector.extract_strided_slice %56 {offsets = [0, 256], sizes = [8, 128], strides = [1, 1]} : vector<8x384xf32> to vector<8x128xf32>
    %77 = arith.addf %76, %15 : vector<8x128xf32>
    %78 = arith.mulf %65, %77 : vector<8x128xf32>
    %79 = arith.extf %75 : vector<8x128xbf16> to vector<8x128xf32>
    %80 = arith.addf %79, %78 : vector<8x128xf32>
    %81 = math.tanh %80 : vector<8x128xf32>
    %cst_28 = arith.constant 1.000000e+00 : f32
    %82 = vector.broadcast %cst_28 : f32 to vector<8x128xf32>
    %83 = arith.subf %82, %74 : vector<8x128xf32>
    %84 = arith.mulf %83, %81 : vector<8x128xf32>
    %85 = arith.mulf %74, %49 : vector<8x128xf32>
    %86 = arith.addf %84, %85 : vector<8x128xf32>
    %87 = arith.truncf %86 : vector<8x128xf32> to vector<8x128xbf16>
    %c0_29 = arith.constant 0 : index
    %c8_30 = arith.constant 8 : index
    %c0_31 = arith.constant 0 : index
    %88 = vector.load %arg7[%c0_29, %c8_30, %c0_31] : memref<1x64x128xbf16, #tpu.memory_space<vmem>>, vector<1x8x128xbf16>
    %89 = vector.shape_cast %88 : vector<1x8x128xbf16> to vector<8x128xbf16>
    %90 = vector.shape_cast %87 : vector<8x128xbf16> to vector<1x8x128xbf16>
    tpu.vector_store %arg7[%c0_29, %c8_30, %c0_31], %90 {strides = array<i32>} : memref<1x64x128xbf16, #tpu.memory_space<vmem>>, vector<1x8x128xbf16>,
    %c16 = arith.constant 16 : index
    %c0_32 = arith.constant 0 : index
    %91 = vector.load %arg8[%c16, %c0_32] : memref<64x384xbf16, #tpu.memory_space<vmem>>, vector<8x384xbf16>
    %92 = arith.truncf %86 : vector<8x128xf32> to vector<8x128xbf16>
    %cst_33 = arith.constant dense<0.000000e+00> : vector<8x384xf32>
    %93 = tpu.matmul %92, %12, %cst_33 {dimension_numbers = #tpu.dot_dimension_numbers<[1], [0], [0], [1], [0, 0, 1, 1], [], []>} : vector<8x128xbf16>, vector<128x384xbf16>, vector<8x384xf32> -> vector<8x384xf32>
    %94 = vector.extract_strided_slice %91 {offsets = [0, 0], sizes = [8, 128], strides = [1, 1]} : vector<8x384xbf16> to vector<8x128xbf16>
    %95 = vector.extract_strided_slice %93 {offsets = [0, 0], sizes = [8, 128], strides = [1, 1]} : vector<8x384xf32> to vector<8x128xf32>
    %96 = arith.extf %94 : vector<8x128xbf16> to vector<8x128xf32>
    %97 = arith.addf %96, %95 : vector<8x128xf32>
    %98 = arith.negf %97 : vector<8x128xf32>
    %99 = math.exp %98 : vector<8x128xf32>
    %cst_34 = arith.constant 1.000000e+00 : f32
    %100 = vector.broadcast %cst_34 : f32 to vector<8x128xf32>
    %101 = arith.addf %100, %99 : vector<8x128xf32>
    %102 = arith.divf %100, %101 : vector<8x128xf32>
    %103 = vector.extract_strided_slice %91 {offsets = [0, 128], sizes = [8, 128], strides = [1, 1]} : vector<8x384xbf16> to vector<8x128xbf16>
    %104 = vector.extract_strided_slice %93 {offsets = [0, 128], sizes = [8, 128], strides = [1, 1]} : vector<8x384xf32> to vector<8x128xf32>
    %105 = arith.extf %103 : vector<8x128xbf16> to vector<8x128xf32>
    %106 = arith.addf %105, %104 : vector<8x128xf32>
    %107 = arith.negf %106 : vector<8x128xf32>
    %108 = math.exp %107 : vector<8x128xf32>
    %cst_35 = arith.constant 1.000000e+00 : f32
    %109 = vector.broadcast %cst_35 : f32 to vector<8x128xf32>
    %110 = arith.addf %109, %108 : vector<8x128xf32>
    %111 = arith.divf %109, %110 : vector<8x128xf32>
    %112 = vector.extract_strided_slice %91 {offsets = [0, 256], sizes = [8, 128], strides = [1, 1]} : vector<8x384xbf16> to vector<8x128xbf16>
    %113 = vector.extract_strided_slice %93 {offsets = [0, 256], sizes = [8, 128], strides = [1, 1]} : vector<8x384xf32> to vector<8x128xf32>
    %114 = arith.addf %113, %15 : vector<8x128xf32>
    %115 = arith.mulf %102, %114 : vector<8x128xf32>
    %116 = arith.extf %112 : vector<8x128xbf16> to vector<8x128xf32>
    %117 = arith.addf %116, %115 : vector<8x128xf32>
    %118 = math.tanh %117 : vector<8x128xf32>
    %cst_36 = arith.constant 1.000000e+00 : f32
    %119 = vector.broadcast %cst_36 : f32 to vector<8x128xf32>
    %120 = arith.subf %119, %111 : vector<8x128xf32>
    %121 = arith.mulf %120, %118 : vector<8x128xf32>
    %122 = arith.mulf %111, %86 : vector<8x128xf32>
    %123 = arith.addf %121, %122 : vector<8x128xf32>
    %124 = arith.truncf %123 : vector<8x128xf32> to vector<8x128xbf16>
    %c0_37 = arith.constant 0 : index
    %c16_38 = arith.constant 16 : index
    %c0_39 = arith.constant 0 : index
    %125 = vector.load %arg7[%c0_37, %c16_38, %c0_39] : memref<1x64x128xbf16, #tpu.memory_space<vmem>>, vector<1x8x128xbf16>
    %126 = vector.shape_cast %125 : vector<1x8x128xbf16> to vector<8x128xbf16>
    %127 = vector.shape_cast %124 : vector<8x128xbf16> to vector<1x8x128xbf16>
    tpu.vector_store %arg7[%c0_37, %c16_38, %c0_39], %127 {strides = array<i32>} : memref<1x64x128xbf16, #tpu.memory_space<vmem>>, vector<1x8x128xbf16>,
    %c24 = arith.constant 24 : index
    %c0_40 = arith.constant 0 : index
    %128 = vector.load %arg8[%c24, %c0_40] : memref<64x384xbf16, #tpu.memory_space<vmem>>, vector<8x384xbf16>
    %129 = arith.truncf %123 : vector<8x128xf32> to vector<8x128xbf16>
    %cst_41 = arith.constant dense<0.000000e+00> : vector<8x384xf32>
    %130 = tpu.matmul %129, %12, %cst_41 {dimension_numbers = #tpu.dot_dimension_numbers<[1], [0], [0], [1], [0, 0, 1, 1], [], []>} : vector<8x128xbf16>, vector<128x384xbf16>, vector<8x384xf32> -> vector<8x384xf32>
    %131 = vector.extract_strided_slice %128 {offsets = [0, 0], sizes = [8, 128], strides = [1, 1]} : vector<8x384xbf16> to vector<8x128xbf16>
    %132 = vector.extract_strided_slice %130 {offsets = [0, 0], sizes = [8, 128], strides = [1, 1]} : vector<8x384xf32> to vector<8x128xf32>
    %133 = arith.extf %131 : vector<8x128xbf16> to vector<8x128xf32>
    %134 = arith.addf %133, %132 : vector<8x128xf32>
    %135 = arith.negf %134 : vector<8x128xf32>
    %136 = math.exp %135 : vector<8x128xf32>
    %cst_42 = arith.constant 1.000000e+00 : f32
    %137 = vector.broadcast %cst_42 : f32 to vector<8x128xf32>
    %138 = arith.addf %137, %136 : vector<8x128xf32>
    %139 = arith.divf %137, %138 : vector<8x128xf32>
    %140 = vector.extract_strided_slice %128 {offsets = [0, 128], sizes = [8, 128], strides = [1, 1]} : vector<8x384xbf16> to vector<8x128xbf16>
    %141 = vector.extract_strided_slice %130 {offsets = [0, 128], sizes = [8, 128], strides = [1, 1]} : vector<8x384xf32> to vector<8x128xf32>
    %142 = arith.extf %140 : vector<8x128xbf16> to vector<8x128xf32>
    %143 = arith.addf %142, %141 : vector<8x128xf32>
    %144 = arith.negf %143 : vector<8x128xf32>
    %145 = math.exp %144 : vector<8x128xf32>
    %cst_43 = arith.constant 1.000000e+00 : f32
    %146 = vector.broadcast %cst_43 : f32 to vector<8x128xf32>
    %147 = arith.addf %146, %145 : vector<8x128xf32>
    %148 = arith.divf %146, %147 : vector<8x128xf32>
    %149 = vector.extract_strided_slice %128 {offsets = [0, 256], sizes = [8, 128], strides = [1, 1]} : vector<8x384xbf16> to vector<8x128xbf16>
    %150 = vector.extract_strided_slice %130 {offsets = [0, 256], sizes = [8, 128], strides = [1, 1]} : vector<8x384xf32> to vector<8x128xf32>
    %151 = arith.addf %150, %15 : vector<8x128xf32>
    %152 = arith.mulf %139, %151 : vector<8x128xf32>
    %153 = arith.extf %149 : vector<8x128xbf16> to vector<8x128xf32>
    %154 = arith.addf %153, %152 : vector<8x128xf32>
    %155 = math.tanh %154 : vector<8x128xf32>
    %cst_44 = arith.constant 1.000000e+00 : f32
    %156 = vector.broadcast %cst_44 : f32 to vector<8x128xf32>
    %157 = arith.subf %156, %148 : vector<8x128xf32>
    %158 = arith.mulf %157, %155 : vector<8x128xf32>
    %159 = arith.mulf %148, %123 : vector<8x128xf32>
    %160 = arith.addf %158, %159 : vector<8x128xf32>
    %161 = arith.truncf %160 : vector<8x128xf32> to vector<8x128xbf16>
    %c0_45 = arith.constant 0 : index
    %c24_46 = arith.constant 24 : index
    %c0_47 = arith.constant 0 : index
    %162 = vector.load %arg7[%c0_45, %c24_46, %c0_47] : memref<1x64x128xbf16, #tpu.memory_space<vmem>>, vector<1x8x128xbf16>
    %163 = vector.shape_cast %162 : vector<1x8x128xbf16> to vector<8x128xbf16>
    %164 = vector.shape_cast %161 : vector<8x128xbf16> to vector<1x8x128xbf16>
    tpu.vector_store %arg7[%c0_45, %c24_46, %c0_47], %164 {strides = array<i32>} : memref<1x64x128xbf16, #tpu.memory_space<vmem>>, vector<1x8x128xbf16>,
    %c32 = arith.constant 32 : index
    %c0_48 = arith.constant 0 : index
    %165 = vector.load %arg8[%c32, %c0_48] : memref<64x384xbf16, #tpu.memory_space<vmem>>, vector<8x384xbf16>
    %166 = arith.truncf %160 : vector<8x128xf32> to vector<8x128xbf16>
    %cst_49 = arith.constant dense<0.000000e+00> : vector<8x384xf32>
    %167 = tpu.matmul %166, %12, %cst_49 {dimension_numbers = #tpu.dot_dimension_numbers<[1], [0], [0], [1], [0, 0, 1, 1], [], []>} : vector<8x128xbf16>, vector<128x384xbf16>, vector<8x384xf32> -> vector<8x384xf32>
    %168 = vector.extract_strided_slice %165 {offsets = [0, 0], sizes = [8, 128], strides = [1, 1]} : vector<8x384xbf16> to vector<8x128xbf16>
    %169 = vector.extract_strided_slice %167 {offsets = [0, 0], sizes = [8, 128], strides = [1, 1]} : vector<8x384xf32> to vector<8x128xf32>
    %170 = arith.extf %168 : vector<8x128xbf16> to vector<8x128xf32>
    %171 = arith.addf %170, %169 : vector<8x128xf32>
    %172 = arith.negf %171 : vector<8x128xf32>
    %173 = math.exp %172 : vector<8x128xf32>
    %cst_50 = arith.constant 1.000000e+00 : f32
    %174 = vector.broadcast %cst_50 : f32 to vector<8x128xf32>
    %175 = arith.addf %174, %173 : vector<8x128xf32>
    %176 = arith.divf %174, %175 : vector<8x128xf32>
    %177 = vector.extract_strided_slice %165 {offsets = [0, 128], sizes = [8, 128], strides = [1, 1]} : vector<8x384xbf16> to vector<8x128xbf16>
    %178 = vector.extract_strided_slice %167 {offsets = [0, 128], sizes = [8, 128], strides = [1, 1]} : vector<8x384xf32> to vector<8x128xf32>
    %179 = arith.extf %177 : vector<8x128xbf16> to vector<8x128xf32>
    %180 = arith.addf %179, %178 : vector<8x128xf32>
    %181 = arith.negf %180 : vector<8x128xf32>
    %182 = math.exp %181 : vector<8x128xf32>
    %cst_51 = arith.constant 1.000000e+00 : f32
    %183 = vector.broadcast %cst_51 : f32 to vector<8x128xf32>
    %184 = arith.addf %183, %182 : vector<8x128xf32>
    %185 = arith.divf %183, %184 : vector<8x128xf32>
    %186 = vector.extract_strided_slice %165 {offsets = [0, 256], sizes = [8, 128], strides = [1, 1]} : vector<8x384xbf16> to vector<8x128xbf16>
    %187 = vector.extract_strided_slice %167 {offsets = [0, 256], sizes = [8, 128], strides = [1, 1]} : vector<8x384xf32> to vector<8x128xf32>
    %188 = arith.addf %187, %15 : vector<8x128xf32>
    %189 = arith.mulf %176, %188 : vector<8x128xf32>
    %190 = arith.extf %186 : vector<8x128xbf16> to vector<8x128xf32>
    %191 = arith.addf %190, %189 : vector<8x128xf32>
    %192 = math.tanh %191 : vector<8x128xf32>
    %cst_52 = arith.constant 1.000000e+00 : f32
    %193 = vector.broadcast %cst_52 : f32 to vector<8x128xf32>
    %194 = arith.subf %193, %185 : vector<8x128xf32>
    %195 = arith.mulf %194, %192 : vector<8x128xf32>
    %196 = arith.mulf %185, %160 : vector<8x128xf32>
    %197 = arith.addf %195, %196 : vector<8x128xf32>
    %198 = arith.truncf %197 : vector<8x128xf32> to vector<8x128xbf16>
    %c0_53 = arith.constant 0 : index
    %c32_54 = arith.constant 32 : index
    %c0_55 = arith.constant 0 : index
    %199 = vector.load %arg7[%c0_53, %c32_54, %c0_55] : memref<1x64x128xbf16, #tpu.memory_space<vmem>>, vector<1x8x128xbf16>
    %200 = vector.shape_cast %199 : vector<1x8x128xbf16> to vector<8x128xbf16>
    %201 = vector.shape_cast %198 : vector<8x128xbf16> to vector<1x8x128xbf16>
    tpu.vector_store %arg7[%c0_53, %c32_54, %c0_55], %201 {strides = array<i32>} : memref<1x64x128xbf16, #tpu.memory_space<vmem>>, vector<1x8x128xbf16>,
    %c40 = arith.constant 40 : index
    %c0_56 = arith.constant 0 : index
    %202 = vector.load %arg8[%c40, %c0_56] : memref<64x384xbf16, #tpu.memory_space<vmem>>, vector<8x384xbf16>
    %203 = arith.truncf %197 : vector<8x128xf32> to vector<8x128xbf16>
    %cst_57 = arith.constant dense<0.000000e+00> : vector<8x384xf32>
    %204 = tpu.matmul %203, %12, %cst_57 {dimension_numbers = #tpu.dot_dimension_numbers<[1], [0], [0], [1], [0, 0, 1, 1], [], []>} : vector<8x128xbf16>, vector<128x384xbf16>, vector<8x384xf32> -> vector<8x384xf32>
    %205 = vector.extract_strided_slice %202 {offsets = [0, 0], sizes = [8, 128], strides = [1, 1]} : vector<8x384xbf16> to vector<8x128xbf16>
    %206 = vector.extract_strided_slice %204 {offsets = [0, 0], sizes = [8, 128], strides = [1, 1]} : vector<8x384xf32> to vector<8x128xf32>
    %207 = arith.extf %205 : vector<8x128xbf16> to vector<8x128xf32>
    %208 = arith.addf %207, %206 : vector<8x128xf32>
    %209 = arith.negf %208 : vector<8x128xf32>
    %210 = math.exp %209 : vector<8x128xf32>
    %cst_58 = arith.constant 1.000000e+00 : f32
    %211 = vector.broadcast %cst_58 : f32 to vector<8x128xf32>
    %212 = arith.addf %211, %210 : vector<8x128xf32>
    %213 = arith.divf %211, %212 : vector<8x128xf32>
    %214 = vector.extract_strided_slice %202 {offsets = [0, 128], sizes = [8, 128], strides = [1, 1]} : vector<8x384xbf16> to vector<8x128xbf16>
    %215 = vector.extract_strided_slice %204 {offsets = [0, 128], sizes = [8, 128], strides = [1, 1]} : vector<8x384xf32> to vector<8x128xf32>
    %216 = arith.extf %214 : vector<8x128xbf16> to vector<8x128xf32>
    %217 = arith.addf %216, %215 : vector<8x128xf32>
    %218 = arith.negf %217 : vector<8x128xf32>
    %219 = math.exp %218 : vector<8x128xf32>
    %cst_59 = arith.constant 1.000000e+00 : f32
    %220 = vector.broadcast %cst_59 : f32 to vector<8x128xf32>
    %221 = arith.addf %220, %219 : vector<8x128xf32>
    %222 = arith.divf %220, %221 : vector<8x128xf32>
    %223 = vector.extract_strided_slice %202 {offsets = [0, 256], sizes = [8, 128], strides = [1, 1]} : vector<8x384xbf16> to vector<8x128xbf16>
    %224 = vector.extract_strided_slice %204 {offsets = [0, 256], sizes = [8, 128], strides = [1, 1]} : vector<8x384xf32> to vector<8x128xf32>
    %225 = arith.addf %224, %15 : vector<8x128xf32>
    %226 = arith.mulf %213, %225 : vector<8x128xf32>
    %227 = arith.extf %223 : vector<8x128xbf16> to vector<8x128xf32>
    %228 = arith.addf %227, %226 : vector<8x128xf32>
    %229 = math.tanh %228 : vector<8x128xf32>
    %cst_60 = arith.constant 1.000000e+00 : f32
    %230 = vector.broadcast %cst_60 : f32 to vector<8x128xf32>
    %231 = arith.subf %230, %222 : vector<8x128xf32>
    %232 = arith.mulf %231, %229 : vector<8x128xf32>
    %233 = arith.mulf %222, %197 : vector<8x128xf32>
    %234 = arith.addf %232, %233 : vector<8x128xf32>
    %235 = arith.truncf %234 : vector<8x128xf32> to vector<8x128xbf16>
    %c0_61 = arith.constant 0 : index
    %c40_62 = arith.constant 40 : index
    %c0_63 = arith.constant 0 : index
    %236 = vector.load %arg7[%c0_61, %c40_62, %c0_63] : memref<1x64x128xbf16, #tpu.memory_space<vmem>>, vector<1x8x128xbf16>
    %237 = vector.shape_cast %236 : vector<1x8x128xbf16> to vector<8x128xbf16>
    %238 = vector.shape_cast %235 : vector<8x128xbf16> to vector<1x8x128xbf16>
    tpu.vector_store %arg7[%c0_61, %c40_62, %c0_63], %238 {strides = array<i32>} : memref<1x64x128xbf16, #tpu.memory_space<vmem>>, vector<1x8x128xbf16>,
    %c48 = arith.constant 48 : index
    %c0_64 = arith.constant 0 : index
    %239 = vector.load %arg8[%c48, %c0_64] : memref<64x384xbf16, #tpu.memory_space<vmem>>, vector<8x384xbf16>
    %240 = arith.truncf %234 : vector<8x128xf32> to vector<8x128xbf16>
    %cst_65 = arith.constant dense<0.000000e+00> : vector<8x384xf32>
    %241 = tpu.matmul %240, %12, %cst_65 {dimension_numbers = #tpu.dot_dimension_numbers<[1], [0], [0], [1], [0, 0, 1, 1], [], []>} : vector<8x128xbf16>, vector<128x384xbf16>, vector<8x384xf32> -> vector<8x384xf32>
    %242 = vector.extract_strided_slice %239 {offsets = [0, 0], sizes = [8, 128], strides = [1, 1]} : vector<8x384xbf16> to vector<8x128xbf16>
    %243 = vector.extract_strided_slice %241 {offsets = [0, 0], sizes = [8, 128], strides = [1, 1]} : vector<8x384xf32> to vector<8x128xf32>
    %244 = arith.extf %242 : vector<8x128xbf16> to vector<8x128xf32>
    %245 = arith.addf %244, %243 : vector<8x128xf32>
    %246 = arith.negf %245 : vector<8x128xf32>
    %247 = math.exp %246 : vector<8x128xf32>
    %cst_66 = arith.constant 1.000000e+00 : f32
    %248 = vector.broadcast %cst_66 : f32 to vector<8x128xf32>
    %249 = arith.addf %248, %247 : vector<8x128xf32>
    %250 = arith.divf %248, %249 : vector<8x128xf32>
    %251 = vector.extract_strided_slice %239 {offsets = [0, 128], sizes = [8, 128], strides = [1, 1]} : vector<8x384xbf16> to vector<8x128xbf16>
    %252 = vector.extract_strided_slice %241 {offsets = [0, 128], sizes = [8, 128], strides = [1, 1]} : vector<8x384xf32> to vector<8x128xf32>
    %253 = arith.extf %251 : vector<8x128xbf16> to vector<8x128xf32>
    %254 = arith.addf %253, %252 : vector<8x128xf32>
    %255 = arith.negf %254 : vector<8x128xf32>
    %256 = math.exp %255 : vector<8x128xf32>
    %cst_67 = arith.constant 1.000000e+00 : f32
    %257 = vector.broadcast %cst_67 : f32 to vector<8x128xf32>
    %258 = arith.addf %257, %256 : vector<8x128xf32>
    %259 = arith.divf %257, %258 : vector<8x128xf32>
    %260 = vector.extract_strided_slice %239 {offsets = [0, 256], sizes = [8, 128], strides = [1, 1]} : vector<8x384xbf16> to vector<8x128xbf16>
    %261 = vector.extract_strided_slice %241 {offsets = [0, 256], sizes = [8, 128], strides = [1, 1]} : vector<8x384xf32> to vector<8x128xf32>
    %262 = arith.addf %261, %15 : vector<8x128xf32>
    %263 = arith.mulf %250, %262 : vector<8x128xf32>
    %264 = arith.extf %260 : vector<8x128xbf16> to vector<8x128xf32>
    %265 = arith.addf %264, %263 : vector<8x128xf32>
    %266 = math.tanh %265 : vector<8x128xf32>
    %cst_68 = arith.constant 1.000000e+00 : f32
    %267 = vector.broadcast %cst_68 : f32 to vector<8x128xf32>
    %268 = arith.subf %267, %259 : vector<8x128xf32>
    %269 = arith.mulf %268, %266 : vector<8x128xf32>
    %270 = arith.mulf %259, %234 : vector<8x128xf32>
    %271 = arith.addf %269, %270 : vector<8x128xf32>
    %272 = arith.truncf %271 : vector<8x128xf32> to vector<8x128xbf16>
    %c0_69 = arith.constant 0 : index
    %c48_70 = arith.constant 48 : index
    %c0_71 = arith.constant 0 : index
    %273 = vector.load %arg7[%c0_69, %c48_70, %c0_71] : memref<1x64x128xbf16, #tpu.memory_space<vmem>>, vector<1x8x128xbf16>
    %274 = vector.shape_cast %273 : vector<1x8x128xbf16> to vector<8x128xbf16>
    %275 = vector.shape_cast %272 : vector<8x128xbf16> to vector<1x8x128xbf16>
    tpu.vector_store %arg7[%c0_69, %c48_70, %c0_71], %275 {strides = array<i32>} : memref<1x64x128xbf16, #tpu.memory_space<vmem>>, vector<1x8x128xbf16>,
    %c56 = arith.constant 56 : index
    %c0_72 = arith.constant 0 : index
    %276 = vector.load %arg8[%c56, %c0_72] : memref<64x384xbf16, #tpu.memory_space<vmem>>, vector<8x384xbf16>
    %277 = arith.truncf %271 : vector<8x128xf32> to vector<8x128xbf16>
    %cst_73 = arith.constant dense<0.000000e+00> : vector<8x384xf32>
    %278 = tpu.matmul %277, %12, %cst_73 {dimension_numbers = #tpu.dot_dimension_numbers<[1], [0], [0], [1], [0, 0, 1, 1], [], []>} : vector<8x128xbf16>, vector<128x384xbf16>, vector<8x384xf32> -> vector<8x384xf32>
    %279 = vector.extract_strided_slice %276 {offsets = [0, 0], sizes = [8, 128], strides = [1, 1]} : vector<8x384xbf16> to vector<8x128xbf16>
    %280 = vector.extract_strided_slice %278 {offsets = [0, 0], sizes = [8, 128], strides = [1, 1]} : vector<8x384xf32> to vector<8x128xf32>
    %281 = arith.extf %279 : vector<8x128xbf16> to vector<8x128xf32>
    %282 = arith.addf %281, %280 : vector<8x128xf32>
    %283 = arith.negf %282 : vector<8x128xf32>
    %284 = math.exp %283 : vector<8x128xf32>
    %cst_74 = arith.constant 1.000000e+00 : f32
    %285 = vector.broadcast %cst_74 : f32 to vector<8x128xf32>
    %286 = arith.addf %285, %284 : vector<8x128xf32>
    %287 = arith.divf %285, %286 : vector<8x128xf32>
    %288 = vector.extract_strided_slice %276 {offsets = [0, 128], sizes = [8, 128], strides = [1, 1]} : vector<8x384xbf16> to vector<8x128xbf16>
    %289 = vector.extract_strided_slice %278 {offsets = [0, 128], sizes = [8, 128], strides = [1, 1]} : vector<8x384xf32> to vector<8x128xf32>
    %290 = arith.extf %288 : vector<8x128xbf16> to vector<8x128xf32>
    %291 = arith.addf %290, %289 : vector<8x128xf32>
    %292 = arith.negf %291 : vector<8x128xf32>
    %293 = math.exp %292 : vector<8x128xf32>
    %cst_75 = arith.constant 1.000000e+00 : f32
    %294 = vector.broadcast %cst_75 : f32 to vector<8x128xf32>
    %295 = arith.addf %294, %293 : vector<8x128xf32>
    %296 = arith.divf %294, %295 : vector<8x128xf32>
    %297 = vector.extract_strided_slice %276 {offsets = [0, 256], sizes = [8, 128], strides = [1, 1]} : vector<8x384xbf16> to vector<8x128xbf16>
    %298 = vector.extract_strided_slice %278 {offsets = [0, 256], sizes = [8, 128], strides = [1, 1]} : vector<8x384xf32> to vector<8x128xf32>
    %299 = arith.addf %298, %15 : vector<8x128xf32>
    %300 = arith.mulf %287, %299 : vector<8x128xf32>
    %301 = arith.extf %297 : vector<8x128xbf16> to vector<8x128xf32>
    %302 = arith.addf %301, %300 : vector<8x128xf32>
    %303 = math.tanh %302 : vector<8x128xf32>
    %cst_76 = arith.constant 1.000000e+00 : f32
    %304 = vector.broadcast %cst_76 : f32 to vector<8x128xf32>
    %305 = arith.subf %304, %296 : vector<8x128xf32>
    %306 = arith.mulf %305, %303 : vector<8x128xf32>
    %307 = arith.mulf %296, %271 : vector<8x128xf32>
    %308 = arith.addf %306, %307 : vector<8x128xf32>
    %309 = arith.truncf %308 : vector<8x128xf32> to vector<8x128xbf16>
    %c0_77 = arith.constant 0 : index
    %c56_78 = arith.constant 56 : index
    %c0_79 = arith.constant 0 : index
    %310 = vector.load %arg7[%c0_77, %c56_78, %c0_79] : memref<1x64x128xbf16, #tpu.memory_space<vmem>>, vector<1x8x128xbf16>
    %311 = vector.shape_cast %310 : vector<1x8x128xbf16> to vector<8x128xbf16>
    %312 = vector.shape_cast %309 : vector<8x128xbf16> to vector<1x8x128xbf16>
    tpu.vector_store %arg7[%c0_77, %c56_78, %c0_79], %312 {strides = array<i32>} : memref<1x64x128xbf16, #tpu.memory_space<vmem>>, vector<1x8x128xbf16>,
    %c0_80 = arith.constant 0 : index
    %c0_81 = arith.constant 0 : index
    %313 = vector.load %arg9[%c0_80, %c0_81] : memref<8x128xf32, #tpu.memory_space<vmem>>, vector<8x128xf32>
    tpu.vector_store %arg9[%c0_80, %c0_81], %308 {strides = array<i32>} : memref<8x128xf32, #tpu.memory_space<vmem>>, vector<8x128xf32>,
    return
  }
  func.func @transform_0(%arg0: i32, %arg1: i32) -> (i32, i32, i32) {
    %c0_i32 = arith.constant 0 : i32
    %c0_i32_0 = arith.constant 0 : i32
    return %arg0, %arg1, %c0_i32 : i32, i32, i32
  }
  func.func @transform_1(%arg0: i32, %arg1: i32) -> (i32, i32) {
    %c0_i32 = arith.constant 0 : i32
    %c0_i32_0 = arith.constant 0 : i32
    %c0_i32_1 = arith.constant 0 : i32
    return %c0_i32, %c0_i32_0 : i32, i32
  }
  func.func @transform_2(%arg0: i32, %arg1: i32) -> (i32, i32) {
    %c0_i32 = arith.constant 0 : i32
    %c0_i32_0 = arith.constant 0 : i32
    %c0_i32_1 = arith.constant 0 : i32
    return %c0_i32, %c0_i32_0 : i32, i32
  }
  func.func @transform_3(%arg0: i32, %arg1: i32) -> (i32, i32) {
    %c0_i32 = arith.constant 0 : i32
    %c0_i32_0 = arith.constant 0 : i32
    %c0_i32_1 = arith.constant 0 : i32
    return %c0_i32, %c0_i32_0 : i32, i32
  }
  func.func @transform_4(%arg0: i32, %arg1: i32) -> (i32, i32) {
    %c0_i32 = arith.constant 0 : i32
    %c0_i32_0 = arith.constant 0 : i32
    %c0_i32_1 = arith.constant 0 : i32
    return %c0_i32, %c0_i32_0 : i32, i32
  }
  func.func @transform_5(%arg0: i32, %arg1: i32) -> (i32, i32, i32) {
    %c0_i32 = arith.constant 0 : i32
    %c0_i32_0 = arith.constant 0 : i32
    return %arg0, %arg1, %c0_i32 : i32, i32, i32
  }
}

</mosaic_0001>

<bundles_post_ra>
// kernel: tpu_custom_call.1
= control target key start
LH: loop header
LB: loop body
LE: loop exit
PB: predicated region body
PF: predicated region fallthrough
CT: control target
= control target key end

     0   :  { %10 = vsyncpa [#allocation5], 0  ;;  %s2764_s0 = inlined_call_operand.hbm [shape: bf16[1,64,128], index: 0, kind: input, shape index: {}]   ;;  %s2765_s1 = inlined_call_operand.hbm [shape: bf16[128,384], index: 1, kind: input, shape index: {}]   ;;  %s2766_s2 = inlined_call_operand.hbm [shape: bf16[128,384], index: 2, kind: input, shape index: {}]   ;;  %s2767_s3 = inlined_call_operand.vmem [shape: f32[1,384], index: 3, kind: input, shape index: {}]   ;;  %s2768_s4 = inlined_call_operand.vmem [shape: f32[1,128], index: 4, kind: input, shape index: {}]   ;;  %s2769_s5 = inlined_call_operand.hbm [shape: bf16[1,64,128], index: 5, kind: output, shape index: {}]  }
   0x1   :  { %11 = vsyncpa [#allocation8], 0 }
   0x2   :  { %12 = vsyncpa [#allocation6], 0  ;;  %s2242_s18 = smov [#allocation7]  }
   0x3   :  { %s30_s19 = sshll.u32 %s2242_s18, 4  ;;  %s31_s19 = int_to_ptr.vmem [resolvable:$true] %s30_s19 }
   0x4   :  { %s2164_s20 = scalar_lea.vmem %s31_s19, 3072  ;;  %p2169_p1 = scmp.lt.s32.totalorder %s31_s19, %s31_s19 }
   0x5   :  { %p2165_p0 = scmp.ne.s32.totalorder %s31_s19, %s2164_s20  ;;  %p2170_p2 = scmp.lt.s32.totalorder %s2164_s20, %s2164_s20 }
   0x7   :  { %p2171_p3 = por %p2170_p2, %p2169_p1 }
   0x9   :  { %p2172_p4 = pnand %p2171_p3, %p2165_p0 }
   0xb   :  { %2175 = shalt.err (!%p2172_p4)
}
   0xc   :  { %s2243_s21 = smov 192   ;;  %s2244_s22 = smov 12  }
   0xd   :  { %36 = dma.hbm_to_vmem [thread:$0]  %s2765_s1, 3072, %s31_s19, [#allocation8], %s2243_s21, %s2243_s21, %s2244_s22  }
   0xe   :  { %s2245_s25 = smov [#allocation4]  }
   0xf   :  { %s18_s26 = sshll.u32 %s2245_s25, 4  ;;  %s19_s26 = int_to_ptr.vmem [resolvable:$true] %s18_s26 }
  0x10   :  { %s2184_s27 = scalar_lea.vmem %s19_s26, 512  ;;  %p2189_p6 = scmp.lt.s32.totalorder %s19_s26, %s19_s26 }
  0x11   :  { %p2185_p5 = scmp.ne.s32.totalorder %s19_s26, %s2184_s27  ;;  %p2190_p7 = scmp.lt.s32.totalorder %s2184_s27, %s2184_s27 }
  0x13   :  { %p2191_p8 = por %p2190_p7, %p2189_p6 }
  0x15   :  { %p2192_p9 = pnand %p2191_p8, %p2185_p5 }
  0x17   :  { %2195 = shalt.err (!%p2192_p9)
}
  0x18   :  { %s2246_s28 = smov 64   ;;  %s2247_s29 = smov 4  }
  0x19   :  { %24 = dma.hbm_to_vmem [thread:$0]  %s2764_s0, 512, %s19_s26, [#allocation5], %s2246_s28, %s2246_s28, %s2247_s29  }
  0x1a   :  { %s2248_s1 = smov [#allocation9]  }
  0x1b   :  { %s42_s7 = sshll.u32 %s2248_s1, 4  ;;  %s43_s7 = int_to_ptr.vmem [resolvable:$true] %s42_s7 }
  0x1c   :  { %s2204_s8 = scalar_lea.vmem %s43_s7, 3072  ;;  %p2209_p11 = scmp.lt.s32.totalorder %s43_s7, %s43_s7 }
  0x1d   :  { %p2205_p10 = scmp.ne.s32.totalorder %s43_s7, %s2204_s8  ;;  %p2210_p12 = scmp.lt.s32.totalorder %s2204_s8, %s2204_s8 }
  0x1f   :  { %p2211_p13 = por %p2210_p12, %p2209_p11 }
  0x21   :  { %p2212_p0 = pnand %p2211_p13, %p2205_p10 }
  0x23   :  { %2215 = shalt.err (!%p2212_p0)
}
  0x24   :  { %48 = dma.hbm_to_vmem [thread:$0]  %s2766_s2, 3072, %s43_s7, [#allocation8], %s2243_s21, %s2243_s21, %s2244_s22  }
  0x25   :  { %2236 = dma.done.wait [#allocation5], 512  }
  0x26   :  { %2237 = vsyncadd [#allocation5], 4294966784 }
  0x27   :  { %2238 = dma.done.wait [#allocation8], 6144  }
  0x28   :  { %2239 = vsyncadd [#allocation8], 4294961152  ;;  %v2249_v0 = vmov 0   ;;  %v1984_v1 = vld [vmem:[#allocation7 + $0xac] ss:$12 sps:$4 sm:$0xff]   ;;  %v2010_v12 = vld [vmem:[#allocation4] sm:$0xff]   ;;  %v110_v55 = vlaneseq }
  0x29   :  { %309 = vmatprep.mubr.bf16.mxu0 %v2249_v0  ;;  %v1986_v2 = vld [vmem:[#allocation7 + $0xa8] ss:$12 sps:$4 sm:$0xff]   ;;  %277 = vmatprep.subr.bf16.mxu0 %v1984_v1  ;;  %v1989_v4 = vld [vmem:[#allocation7 + $0x90] ss:$12 sps:$4 sm:$0xff]   ;;  %v1992_v6 = vld [vmem:[#allocation7 + $0x78] ss:$12 sps:$4 sm:$0xff]  }
  0x2a   :  { %v1987_v3 = vld [vmem:[#allocation7 + $0x94] ss:$12 sps:$4 sm:$0xff]   ;;  %278 = vmatpush1.bf16.msra.mxu0 %v1986_v2  ;;  %v1990_v5 = vld [vmem:[#allocation7 + $0x7c] ss:$12 sps:$4 sm:$0xff]   ;;  %v1993_v7 = vld [vmem:[#allocation7 + $0x64] ss:$12 sps:$4 sm:$0xff]   ;;  %1804 = vmatprep.mubr.bf16.mxu1 %v2010_v12 }
  0x2b   :  { %279 = vmatprep.subr.bf16.mxu0 %v1987_v3  ;;  %v2005_v8 = vld [vmem:[#allocation7 + $0xb0] ss:$12 sps:$4 sm:$0xff]   ;;  %v1995_v9 = vld [vmem:[#allocation7 + $0x60] ss:$12 sps:$4 sm:$0xff]   ;;  %v2009_v11 = vld [vmem:[#allocation7 + $0x98] ss:$12 sps:$4 sm:$0xff]  }
  0x2c   :  { %v1996_v10 = vld [vmem:[#allocation7 + $0x4c] ss:$12 sps:$4 sm:$0xff]   ;;  %1788 = vmatprep.subr.bf16.mxu1 %v2005_v8  ;;  %v1998_v13 = vld [vmem:[#allocation7 + $0x48] ss:$12 sps:$4 sm:$0xff]   ;;  %v2001_v17 = vld [vmem:[#allocation7 + $0x30] ss:$12 sps:$4 sm:$0xff]  }
  0x2d   :  { %1789 = vmatpush3.bf16.msra.mxu1 %v2005_v8  ;;  %v2014_v14 = vld [vmem:[#allocation7 + $0x80] ss:$12 sps:$4 sm:$0xff]   ;;  %v2018_v16 = vld [vmem:[#allocation7 + $0x68] ss:$12 sps:$4 sm:$0xff]   ;;  %v2023_v19 = vld [vmem:[#allocation7 + $0x50] ss:$12 sps:$4 sm:$0xff]  }
  0x2e   :  { %280 = vmatpush1.bf16.msra.mxu0 %v1989_v4  ;;  %1790 = vmatprep.subr.bf16.mxu1 %v2009_v11  ;;  %v1999_v15 = vld [vmem:[#allocation7 + $0x34] ss:$12 sps:$4 sm:$0xff]   ;;  %v2002_v18 = vld [vmem:[#allocation7 + $0x1c] ss:$12 sps:$4 sm:$0xff]   ;;  %v2004_v20 = vld [vmem:[#allocation7 + $0x18] ss:$12 sps:$4 sm:$0xff]  }
  0x2f   :  { %281 = vmatprep.subr.bf16.mxu0 %v1990_v5  ;;  %v2006_v21 = vld [vmem:[#allocation7 + $0x4] ss:$12 sps:$4 sm:$0xff]   ;;  %v2008_v23 = vld [vmem:[#allocation7] ss:$12 sps:$4 sm:$0xff]   ;;  %v2299_v26 = vld [vmem:[#allocation9 + $0xa8] ss:$12 sps:$4 sm:$0xff]  }
  0x30   :  { %v2027_v22 = vld [vmem:[#allocation7 + $0x38] ss:$12 sps:$4 sm:$0xff]   ;;  %v2032_v25 = vld [vmem:[#allocation7 + $0x20] ss:$12 sps:$4 sm:$0xff]   ;;  %v2036_v28 = vld [vmem:[#allocation7 + $0x8] ss:$12 sps:$4 sm:$0xff]  }
  0x31   :  { %1791 = vmatpush3.bf16.msra.mxu1 %v2009_v11  ;;  %v2297_v24 = vld [vmem:[#allocation9 + $0xac] ss:$12 sps:$4 sm:$0xff]   ;;  %v2302_v27 = vld [vmem:[#allocation9 + $0x94] ss:$12 sps:$4 sm:$0xff]   ;;  %v2305_v29 = vld [vmem:[#allocation9 + $0x90] ss:$12 sps:$4 sm:$0xff]  }
  0x32   :  { %282 = vmatpush1.bf16.msra.mxu0 %v1992_v6  ;;  %1792 = vmatprep.subr.bf16.mxu1 %v2014_v14  ;;  %v2309_v30 = vld [vmem:[#allocation9 + $0x7c] ss:$12 sps:$4 sm:$0xff]   ;;  %v2312_v32 = vld [vmem:[#allocation9 + $0x78] ss:$12 sps:$4 sm:$0xff]   ;;  %v2250_v35 = vmov 0.0   ;;  %v2028_v37 = vld [vmem:[#allocation4 + $0x10] sm:$0xff]  }
  0x33   :  { %283 = vmatprep.subr.bf16.mxu0 %v1993_v7  ;;  %v2019_v31 = vld [vmem:[#allocation4 + $0x8] sm:$0xff]   ;;  %v2315_v33 = vld [vmem:[#allocation9 + $0x64] ss:$12 sps:$4 sm:$0xff]   ;;  %v2335_v41 = vld [vmem:[#allocation9 + $0x34] ss:$12 sps:$4 sm:$0xff]   ;;  %vm2251_vm0 = vmmov 0  }
  0x34   :  { %v2317_v34 = vld [vmem:[#allocation9 + $0xb0] ss:$12 sps:$4 sm:$0xff]   ;;  %v2321_v36 = vld [vmem:[#allocation9 + $0x60] ss:$12 sps:$4 sm:$0xff]   ;;  %v2328_v39 = vld [vmem:[#allocation9 + $0x98] ss:$12 sps:$4 sm:$0xff]  }
  0x35   :  { %1793 = vmatpush3.bf16.msra.mxu1 %v2014_v14  ;;  %v2325_v38 = vld [vmem:[#allocation9 + $0x4c] ss:$12 sps:$4 sm:$0xff]   ;;  %v2332_v40 = vld [vmem:[#allocation9 + $0x48] ss:$12 sps:$4 sm:$0xff]   ;;  %v2342_v44 = vld [vmem:[#allocation9 + $0x30] ss:$12 sps:$4 sm:$0xff]  }
  0x36   :  { %284 = vmatpush1.bf16.msra.mxu0 %v1995_v9  ;;  %1794 = vmatprep.subr.bf16.mxu1 %v2018_v16  ;;  %v2338_v42 = vld [vmem:[#allocation9 + $0x80] ss:$12 sps:$4 sm:$0xff]   ;;  %v2037_v43 = vld [vmem:[#allocation4 + $0x18] sm:$0xff]   ;;  %v2349_v46 = vld [vmem:[#allocation9 + $0x68] ss:$12 sps:$4 sm:$0xff]   ;;  %v2252_v53 = vmov 0.0|0.0  }
  0x37   :  { %285 = vmatprep.subr.bf16.mxu0 %v1996_v10  ;;  %v2346_v45 = vld [vmem:[#allocation9 + $0x1c] ss:$12 sps:$4 sm:$0xff]   ;;  %v2355_v47 = vld [vmem:[#allocation9 + $0x18] ss:$12 sps:$4 sm:$0xff]   ;;  %v2365_v50 = vld [vmem:[#allocation9] ss:$12 sps:$4 sm:$0xff]  }
  0x38   :  { %v2358_v48 = vld [vmem:[#allocation9 + $0x4] ss:$12 sps:$4 sm:$0xff]   ;;  %v2376_v52 = vld [vmem:[#allocation9 + $0x20] ss:$12 sps:$4 sm:$0xff]   ;;  %v2383_v54 = vld [vmem:[#allocation9 + $0x8] ss:$12 sps:$4 sm:$0xff]  }
  0x39   :  { %1795 = vmatpush3.bf16.msra.mxu1 %v2018_v16  ;;  %v2361_v49 = vld [vmem:[#allocation9 + $0x50] ss:$12 sps:$4 sm:$0xff]   ;;  %v2370_v51 = vld [vmem:[#allocation9 + $0x38] ss:$12 sps:$4 sm:$0xff]   ;;  %v111_v56 = vshrl.u32 %v110_v55, 7 }
  0x3a   :  { %286 = vmatpush1.bf16.msra.mxu0 %v1998_v13  ;;  %1796 = vmatprep.subr.bf16.mxu1 %v2023_v19  ;;  %v108_v59 = vld [vmem:[%s2767_s3] sm:$0x7] }
  0x3b   :  { %287 = vmatprep.subr.bf16.mxu0 %v1999_v15  ;;  %v112_v57 = vsub.s32 0, %v111_v56  ;;  %v116_v58 = vsub.s32 1, %v111_v56  ;;  %v120_v3 = vsub.s32 2, %v111_v56 }
  0x3d   :  { %1797 = vmatpush3.bf16.msra.mxu1 %v2023_v19  ;;  %v2423_v60 = vrot.slane %v108_v59, %v112_v57  ;;  %v2425_v61 = vrot.slane %v108_v59, %v116_v58  ;;  %v121_v9 = vrot.slane %v108_v59, %v120_v3 }
  0x3e   :  { %288 = vmatpush1.bf16.msra.mxu0 %v2001_v17  ;;  %1798 = vmatprep.subr.bf16.mxu1 %v2027_v22 }
  0x3f   :  { %289 = vmatprep.subr.bf16.mxu0 %v2002_v18 }
  0x41   :  { %1799 = vmatpush3.bf16.msra.mxu1 %v2027_v22 }
  0x42   :  { %290 = vmatpush1.bf16.msra.mxu0 %v2004_v20  ;;  %1800 = vmatprep.subr.bf16.mxu1 %v2032_v25 }
  0x43   :  { %291 = vmatprep.subr.bf16.mxu0 %v2006_v21 }
  0x45   :  { %1801 = vmatpush3.bf16.msra.mxu1 %v2032_v25 }
  0x46   :  { %292 = vmatpush1.bf16.msra.mxu0 %v2008_v23  ;;  %1802 = vmatprep.subr.bf16.mxu1 %v2036_v28 }
  0x47   :  { %682 = vmatprep.subr.bf16.mxu0 %v2297_v24 }
  0x49   :  { %310 = vmatmul.mubr.bf16.vlgmr.msra.gmra.mxu0 %v2010_v12  ;;  %1803 = vmatpush3.bf16.msra.mxu1 %v2036_v28 }
  0x4a   :  { %683 = vmatpush1.bf16.msra.mxu0 %v2299_v26  ;;  %319 = vmatprep.mubr.bf16.mxu0 %v2249_v0 }
  0x4b   :  { %684 = vmatprep.subr.bf16.mxu0 %v2302_v27  ;;  %1812 = vmatprep.subr.bf16.mxu1 %v2250_v35 }
  0x4c   :  { %1805 = vmatmul.mubr.bf16.vlgmr.msra.gmra.mxu1 %v2019_v31 }
  0x4d   :  { %1813 = vmatpush3.bf16.msra.mxu1 %v2317_v34  ;;  %1808 = vmatprep.mubr.bf16.mxu1 %v2028_v37 }
  0x4e   :  { %685 = vmatpush1.bf16.msra.mxu0 %v2305_v29  ;;  %1814 = vmatprep.subr.bf16.mxu1 %v2250_v35 }
  0x4f   :  { %686 = vmatprep.subr.bf16.mxu0 %v2309_v30 }
  0x51   :  { %320 = vmatmul.mubr.bf16.gmra.mxu0 %v2019_v31  ;;  %1815 = vmatpush3.bf16.msra.mxu1 %v2328_v39 }
  0x52   :  { %687 = vmatpush1.bf16.msra.mxu0 %v2312_v32  ;;  %329 = vmatprep.mubr.bf16.mxu0 %v2249_v0 }
  0x53   :  { %688 = vmatprep.subr.bf16.mxu0 %v2315_v33  ;;  %1816 = vmatprep.subr.bf16.mxu1 %v2250_v35 }
  0x54   :  { %1809 = vmatmul.mubr.bf16.gmra.mxu1 %v2037_v43 }
  0x55   :  { %1817 = vmatpush3.bf16.msra.mxu1 %v2338_v42  ;;  %1828 = vmatprep.mubr.msk.bf16.mxu1 %vm2251_vm0, %v2250_v35 }
  0x56   :  { %689 = vmatpush1.bf16.msra.mxu0 %v2321_v36  ;;  %1818 = vmatprep.subr.bf16.mxu1 %v2250_v35 }
  0x57   :  { %690 = vmatprep.subr.bf16.mxu0 %v2325_v38 }
  0x59   :  { %330 = vmatmul.mubr.bf16.gmra.mxu0 %v2028_v37  ;;  %1819 = vmatpush3.bf16.msra.mxu1 %v2349_v46 }
  0x5a   :  { %691 = vmatpush1.bf16.msra.mxu0 %v2332_v40  ;;  %339 = vmatprep.mubr.bf16.mxu0 %v2249_v0 }
  0x5b   :  { %692 = vmatprep.subr.bf16.mxu0 %v2335_v41  ;;  %1820 = vmatprep.subr.bf16.mxu1 %v2250_v35 }
  0x5d   :  { %1821 = vmatpush3.bf16.msra.mxu1 %v2361_v49 }
  0x5e   :  { %693 = vmatpush1.bf16.msra.mxu0 %v2342_v44  ;;  %1822 = vmatprep.subr.bf16.mxu1 %v2250_v35 }
  0x5f   :  { %694 = vmatprep.subr.bf16.mxu0 %v2346_v45 }
  0x61   :  { %340 = vmatmul.mubr.bf16.gmra.mxu0 %v2037_v43  ;;  %1823 = vmatpush3.bf16.msra.mxu1 %v2370_v51 }
  0x62   :  { %695 = vmatpush1.bf16.msra.mxu0 %v2355_v47  ;;  %714 = vmatprep.mubr.bf16.mxu0 %v2249_v0 }
  0x63   :  { %696 = vmatprep.subr.bf16.mxu0 %v2358_v48  ;;  %1824 = vmatprep.subr.bf16.mxu1 %v2250_v35 }
  0x65   :  { %1825 = vmatpush3.bf16.msra.mxu1 %v2376_v52 }
  0x66   :  { %697 = vmatpush1.bf16.msra.mxu0 %v2365_v50  ;;  %1826 = vmatprep.subr.bf16.mxu1 %v2250_v35 }
  0x67   :  { %795 = vmatprep.subr.bf16.mxu0 %v2297_v24 }
  0x69   :  { %715 = vmatmul.mubr.bf16.vlgmr.msra.gmra.mxu0 %v2252_v53  ;;  %1827 = vmatpush3.bf16.msra.mxu1 %v2383_v54 }
  0x6a   :  { %796 = vmatpush1.bf16.msra.mxu0 %v2299_v26  ;;  %827 = vmatprep.mubr.bf16.mxu0 %v2249_v0 }
  0x6b   :  { %797 = vmatprep.subr.bf16.mxu0 %v2302_v27  ;;  %1832 = vmatprep.subr.bf16.mxu1 %v2250_v35 }
  0x6c   :  { %1829 = vmatmul.mubr.bf16.vlgmr.msra.gmra.mxu1 %v2252_v53 }
  0x6d   :  { %1833 = vmatpush3.bf16.msra.mxu1 %v2317_v34  ;;  %1848 = vmatprep.mubr.msk.bf16.mxu1 %vm2251_vm0, %v2250_v35 }
  0x6e   :  { %798 = vmatpush1.bf16.msra.mxu0 %v2305_v29  ;;  %1834 = vmatprep.subr.bf16.mxu1 %v2250_v35 }
  0x6f   :  { %799 = vmatprep.subr.bf16.mxu0 %v2309_v30 }
  0x71   :  { %1835 = vmatpush3.bf16.msra.mxu1 %v2328_v39 }
  0x72   :  { %800 = vmatpush1.bf16.msra.mxu0 %v2312_v32  ;;  %1836 = vmatprep.subr.bf16.mxu1 %v2250_v35 }
  0x73   :  { %801 = vmatprep.subr.bf16.mxu0 %v2315_v33 }
  0x75   :  { %1837 = vmatpush3.bf16.msra.mxu1 %v2338_v42 }
  0x76   :  { %802 = vmatpush1.bf16.msra.mxu0 %v2321_v36  ;;  %1838 = vmatprep.subr.bf16.mxu1 %v2250_v35 }
  0x77   :  { %803 = vmatprep.subr.bf16.mxu0 %v2325_v38 }
  0x79   :  { %1839 = vmatpush3.bf16.msra.mxu1 %v2349_v46 }
  0x7a   :  { %804 = vmatpush1.bf16.msra.mxu0 %v2332_v40  ;;  %1840 = vmatprep.subr.bf16.mxu1 %v2250_v35 }
  0x7b   :  { %805 = vmatprep.subr.bf16.mxu0 %v2335_v41 }
  0x7d   :  { %1841 = vmatpush3.bf16.msra.mxu1 %v2361_v49 }
  0x7e   :  { %806 = vmatpush1.bf16.msra.mxu0 %v2342_v44  ;;  %1842 = vmatprep.subr.bf16.mxu1 %v2250_v35 }
  0x7f   :  { %807 = vmatprep.subr.bf16.mxu0 %v2346_v45 }
  0x81   :  { %1843 = vmatpush3.bf16.msra.mxu1 %v2370_v51 }
  0x82   :  { %808 = vmatpush1.bf16.msra.mxu0 %v2355_v47  ;;  %1844 = vmatprep.subr.bf16.mxu1 %v2250_v35 }
  0x83   :  { %809 = vmatprep.subr.bf16.mxu0 %v2358_v48 }
  0x85   :  { %1845 = vmatpush3.bf16.msra.mxu1 %v2376_v52 }
  0x86   :  { %810 = vmatpush1.bf16.msra.mxu0 %v2365_v50  ;;  %1846 = vmatprep.subr.bf16.mxu1 %v2250_v35 }
  0x87   :  { %908 = vmatprep.subr.bf16.mxu0 %v2297_v24 }
  0x89   :  { %1847 = vmatpush3.bf16.msra.mxu1 %v2383_v54 }
  0x8a   :  { %1852 = vmatprep.subr.bf16.mxu1 %v2250_v35 }
 0x109   :  { %v311_v62 = vpop.f32.mrf.mxu0 }
 0x10a   :  { %v312_v1 = vadd.f32 %v311_v62, %v2423_v60 }
 0x10b   :  { %v313_v63 = vpop.f32.mrf.mxu0 }
 0x10c   :  { %v314_v2 = vadd.f32 %v313_v63, %v2425_v61  ;;  %v1806_v13 = vpop.f32.mrf.mxu1 }
 0x10d   :  { %v315_v4 = vpop.f32.mrf.mxu0  ;;  %v393_v16 = vadd.f32 %v1806_v13, %v121_v9 }
 0x10e   :  { %v2429_v5 = vpack.c.bf16 %v314_v2, %v312_v1  ;;  %v316_v7 = vadd.f32 %v315_v4, %v2423_v60  ;;  %v384_v18 = vpop.f32.mrf.mxu1 }
 0x10f   :  { %v317_v6 = vpop.f32.mrf.mxu0  ;;  %v1693_v20 = vpack.c.bf16 %v393_v16, %v393_v16  ;;  %v385_v21 = vadd.f32 %v384_v18, %v121_v9 }
 0x110   :  { %v318_v8 = vadd.f32 %v317_v6, %v2425_v61  ;;  %v1807_v23 = vpop.f32.mrf.mxu1 }
 0x111   :  { %v321_v10 = vpop.f32.mrf.mxu0  ;;  %500 = vst [vmem:[#allocation2 + $0x20] sm:$0xf] %v1693_v20  ;;  %v1689_v31 = vpack.c.bf16 %v385_v21, %v385_v21  ;;  %v396_v37 = vadd.f32 %v1807_v23, %v121_v9 }
 0x112   :  { %v2433_v11 = vpack.c.bf16 %v318_v8, %v316_v7  ;;  %v322_v14 = vadd.f32 %v321_v10, %v2423_v60  ;;  %v387_v53 = vpop.f32.mrf.mxu1 }
 0x113   :  { %v323_v12 = vpop.f32.mrf.mxu0  ;;  %496 = vst [vmem:[#allocation2 + $0x8] sm:$0xf] %v1689_v31  ;;  %v1695_v56 = vpack.c.bf16 %v396_v37, %v396_v37  ;;  %v388_v57 = vadd.f32 %v387_v53, %v121_v9 }
 0x114   :  { %v324_v15 = vadd.f32 %v323_v12, %v2425_v61  ;;  %v1810_v59 = vpop.f32.mrf.mxu1 }
 0x115   :  { %v325_v17 = vpop.f32.mrf.mxu0  ;;  %502 = vst [vmem:[#allocation2 + $0x2c] sm:$0xf] %v1695_v56  ;;  %v1691_v1 = vpack.c.bf16 %v388_v57, %v388_v57  ;;  %v409_v2 = vadd.f32 %v1810_v59, %v121_v9 }
 0x116   :  { %v2437_v19 = vpack.c.bf16 %v324_v15, %v322_v14  ;;  %v326_v25 = vadd.f32 %v325_v17, %v2423_v60  ;;  %v400_v4 = vpop.f32.mrf.mxu1 }
 0x117   :  { %v327_v22 = vpop.f32.mrf.mxu0  ;;  %498 = vst [vmem:[#allocation2 + $0x14] sm:$0xf] %v1691_v1  ;;  %v1701_v7 = vpack.c.bf16 %v409_v2, %v409_v2  ;;  %v401_v8 = vadd.f32 %v400_v4, %v121_v9 }
 0x118   :  { %v328_v28 = vadd.f32 %v327_v22, %v2425_v61  ;;  %v1811_v12 = vpop.f32.mrf.mxu1 }
 0x119   :  { %v331_v43 = vpop.f32.mrf.mxu0  ;;  %508 = vst [vmem:[#allocation2 + $0x50] sm:$0xf] %v1701_v7  ;;  %v1697_v15 = vpack.c.bf16 %v401_v8, %v401_v8  ;;  %v412_v16 = vadd.f32 %v1811_v12, %v121_v9 }
 0x11a   :  { %v2441_v55 = vpack.c.bf16 %v328_v28, %v326_v25  ;;  %v332_v62 = vadd.f32 %v331_v43, %v2423_v60  ;;  %v403_v18 = vpop.f32.mrf.mxu1 }
 0x11b   :  { %v333_v58 = vpop.f32.mrf.mxu0  ;;  %504 = vst [vmem:[#allocation2 + $0x38] sm:$0xf] %v1697_v15  ;;  %v1703_v21 = vpack.c.bf16 %v412_v16, %v412_v16  ;;  %v404_v22 = vadd.f32 %v403_v18, %v121_v9 }
 0x11c   :  { %v334_v63 = vadd.f32 %v333_v58, %v2425_v61  ;;  %v763_v58 = vunpack.c.l.bf16 %v2429_v5 }
 0x11d   :  { %v335_v3 = vpop.f32.mrf.mxu0  ;;  %510 = vst [vmem:[#allocation2 + $0x5c] sm:$0xf] %v1703_v21  ;;  %v1699_v31 = vpack.c.bf16 %v404_v22, %v404_v22 }
 0x11e   :  { %v2445_v6 = vpack.c.bf16 %v334_v63, %v332_v62  ;;  %v336_v13 = vadd.f32 %v335_v3, %v2423_v60  ;;  %v772_v63 = vrot.slane %v2429_v5, 4  ;;  %v2462_v5 = vld [vmem:[%s2768_s4] ss:$0 sm:$0xff]  ;;  %v2465_v21 = vld [vmem:[#allocation2 + $0x8] ss:$12 sps:$4 sm:$0xff]   ;;  %s2253_s4 = smov [#allocation10]  }
 0x11f   :  { %v337_v10 = vpop.f32.mrf.mxu0  ;;  %506 = vst [vmem:[#allocation2 + $0x44] sm:$0xf] %v1699_v31  ;;  %s1590_s12 = sshll.u32 %s2253_s4, 4  ;;  %s1591_s12 = int_to_ptr.vmem [resolvable:$true] %s1590_s12 }
 0x120   :  { %v338_v14 = vadd.f32 %v337_v10, %v2425_v61  ;;  %v774_v4 = vunpack.c.l.bf16 %v772_v63  ;;  %s2216_s13 = scalar_lea.vmem %s1591_s12, 512  ;;  %p2221_p2 = scmp.lt.s32.totalorder %s1591_s12, %s1591_s12 }
 0x121   :  { %v341_v17 = vpop.f32.mrf.mxu0  ;;  %p2217_p1 = scmp.ne.s32.totalorder %s1591_s12, %s2216_s13  ;;  %p2222_p3 = scmp.lt.s32.totalorder %s2216_s13, %s2216_s13 }
 0x122   :  { %v2449_v20 = vpack.c.bf16 %v338_v14, %v336_v13  ;;  %v342_v25 = vadd.f32 %v341_v17, %v2423_v60 }
 0x123   :  { %v343_v23 = vpop.f32.mrf.mxu0  ;;  %p2223_p4 = por %p2222_p3, %p2221_p2 }
 0x124   :  { %v344_v28 = vadd.f32 %v343_v23, %v2425_v61 }
 0x125   :  { %v345_v37 = vpop.f32.mrf.mxu0  ;;  %p2224_p5 = pnand %p2223_p4, %p2217_p1 }
 0x126   :  { %v2453_v43 = vpack.c.bf16 %v344_v28, %v342_v25  ;;  %v346_v56 = vadd.f32 %v345_v37, %v2423_v60  ;;  %v784_v25 = vunpack.c.l.bf16 %v2465_v21 }
 0x127   :  { %v347_v53 = vpop.f32.mrf.mxu0 }
 0x128   :  { %v348_v57 = vadd.f32 %v347_v53, %v2425_v61 }
 0x129   :  { %v716_v59 = vpop.f32.mrf.mxu0 }
 0x12a   :  { %v1702_v9 = vpack.c.bf16 %v348_v57, %v346_v56  ;;  %v764_v62 = vadd.f32 %v763_v58, %v716_v59 }
 0x12b   :  { %v718_v1 = vpop.f32.mrf.mxu0 }
 0x12c   :  { %509 = vst [vmem:[#allocation2 + $0x54] sm:$0xff] %v1702_v9  ;;  %v1672_v2 = vmul.f32 -1.442695, %v764_v62  ;;  %v775_v8 = vadd.f32 %v774_v4, %v718_v1  ;;  %v757_v10 = vpop.f32.mrf.mxu1  ;;  %v876_v9 = vunpack.c.l.bf16 %v2433_v11 }
 0x12d   :  { %v720_v3 = vpop.f32.mrf.mxu0  ;;  %v782_v18 = vadd.f32 %v2462_v5, %v757_v10 }
 0x12e   :  { %2052 = vpow2.f32 %v1672_v2  ;;  %v1673_v12 = vmul.f32 -1.442695, %v775_v8  ;;  %v1830_v60 = vpop.f32.mrf.mxu1  ;;  %v885_v2 = vrot.slane %v2433_v11, 4 }
 0x12f   :  { %v721_v7 = vpop.f32.mrf.mxu0 }
 0x130   :  { %v760_v13 = vpop.f32.mrf.mxu1  ;;  %2054 = vpow2.f32 %v1673_v12  ;;  %v887_v12 = vunpack.c.l.bf16 %v885_v2 }
 0x132   :  { %v1831_v61 = vpop.f32.mrf.mxu1 }
 0x13b   :  { %v2053_v14 = vpop.eup %2052 }
 0x13c   :  { %v768_v15 = vadd.f32 1.0, %v2053_v14 }
 0x13d   :  { %v2055_v16 = vpop.eup %2054 }
 0x13e   :  { %2056 = vrcp.f32 %v768_v15  ;;  %v779_v17 = vadd.f32 1.0, %v2055_v16 }
 0x140   :  { %2058 = vrcp.f32 %v779_v17 }
 0x14b   :  { %v2057_v22 = vpop.eup %2056 }
 0x14c   :  { %v783_v23 = vmul.f32 %v2057_v22, %v782_v18 }
 0x14d   :  { %v2059_v31 = vpop.eup %2058 }
 0x14e   :  { %v785_v28 = vadd.f32 %v784_v25, %v783_v23  ;;  %v787_v37 = vsub.f32 1.0, %v2059_v31  ;;  %v789_v57 = vmul.f32 0.0, %v2059_v31  ;;  %v897_v25 = vunpack.c.h.bf16 %v2465_v21 }
 0x14f   :  { %v989_v21 = vunpack.c.l.bf16 %v2437_v19 }
 0x150   :  { %2060 = vtanh.f32 %v785_v28 }
 0x15d   :  { %v2061_v53 = vpop.eup %2060 }
 0x15e   :  { %v788_v56 = vmul.f32 %v2061_v53, %v787_v37 }
 0x160   :  { %v2468_v58 = vadd.f32 %v789_v57, %v788_v56 }
 0x162   :  { %v791_v59 = vpack.c.bf16 %v2468_v58, %v2468_v58 }
 0x164   :  { %792 = vst [vmem:[#allocation10] sm:$0xf] %v791_v59  ;;  %828 = vmatmul.mubr.bf16.vlgmr.msra.gmra.mxu0 %v791_v59  ;;  %1849 = vmatmul.mubr.bf16.vlgmr.msra.gmra.mxu1 %v791_v59 }
 0x165   :  { %909 = vmatpush1.bf16.msra.mxu0 %v2299_v26  ;;  %1853 = vmatpush3.bf16.msra.mxu1 %v2317_v34 }
 0x166   :  { %910 = vmatprep.subr.bf16.mxu0 %v2302_v27  ;;  %1854 = vmatprep.subr.bf16.mxu1 %v2250_v35 }
 0x167   :  { %940 = vmatprep.mubr.bf16.mxu0 %v2249_v0  ;;  %1868 = vmatprep.mubr.msk.bf16.mxu1 %vm2251_vm0, %v2250_v35 }
 0x169   :  { %911 = vmatpush1.bf16.msra.mxu0 %v2305_v29  ;;  %1855 = vmatpush3.bf16.msra.mxu1 %v2328_v39 }
 0x16a   :  { %912 = vmatprep.subr.bf16.mxu0 %v2309_v30  ;;  %1856 = vmatprep.subr.bf16.mxu1 %v2250_v35 }
 0x16d   :  { %913 = vmatpush1.bf16.msra.mxu0 %v2312_v32  ;;  %1857 = vmatpush3.bf16.msra.mxu1 %v2338_v42 }
 0x16e   :  { %914 = vmatprep.subr.bf16.mxu0 %v2315_v33  ;;  %1858 = vmatprep.subr.bf16.mxu1 %v2250_v35 }
 0x171   :  { %915 = vmatpush1.bf16.msra.mxu0 %v2321_v36  ;;  %1859 = vmatpush3.bf16.msra.mxu1 %v2349_v46 }
 0x172   :  { %916 = vmatprep.subr.bf16.mxu0 %v2325_v38  ;;  %1860 = vmatprep.subr.bf16.mxu1 %v2250_v35 }
 0x175   :  { %917 = vmatpush1.bf16.msra.mxu0 %v2332_v40  ;;  %1861 = vmatpush3.bf16.msra.mxu1 %v2361_v49 }
 0x176   :  { %918 = vmatprep.subr.bf16.mxu0 %v2335_v41  ;;  %1862 = vmatprep.subr.bf16.mxu1 %v2250_v35 }
 0x179   :  { %919 = vmatpush1.bf16.msra.mxu0 %v2342_v44  ;;  %1863 = vmatpush3.bf16.msra.mxu1 %v2370_v51 }
 0x17a   :  { %920 = vmatprep.subr.bf16.mxu0 %v2346_v45  ;;  %1864 = vmatprep.subr.bf16.mxu1 %v2250_v35 }
 0x17d   :  { %921 = vmatpush1.bf16.msra.mxu0 %v2355_v47  ;;  %1865 = vmatpush3.bf16.msra.mxu1 %v2376_v52 }
 0x17e   :  { %922 = vmatprep.subr.bf16.mxu0 %v2358_v48  ;;  %1866 = vmatprep.subr.bf16.mxu1 %v2250_v35 }
 0x181   :  { %923 = vmatpush1.bf16.msra.mxu0 %v2365_v50  ;;  %1867 = vmatpush3.bf16.msra.mxu1 %v2383_v54 }
 0x182   :  { %1021 = vmatprep.subr.bf16.mxu0 %v2297_v24  ;;  %1872 = vmatprep.subr.bf16.mxu1 %v2250_v35 }
 0x224   :  { %v829_v62 = vpop.f32.mrf.mxu0  ;;  %v870_v63 = vpop.f32.mrf.mxu1 }
 0x225   :  { %v877_v1 = vadd.f32 %v876_v9, %v829_v62  ;;  %v895_v22 = vadd.f32 %v2462_v5, %v870_v63 }
 0x226   :  { %v831_v3 = vpop.f32.mrf.mxu0  ;;  %v1850_v4 = vpop.f32.mrf.mxu1 }
 0x227   :  { %v1674_v7 = vmul.f32 -1.442695, %v877_v1  ;;  %v888_v61 = vadd.f32 %v887_v12, %v831_v3  ;;  %v998_v1 = vrot.slane %v2437_v19, 4 }
 0x228   :  { %v833_v8 = vpop.f32.mrf.mxu0  ;;  %v873_v10 = vpop.f32.mrf.mxu1 }
 0x229   :  { %2062 = vpow2.f32 %v1674_v7  ;;  %v1675_v14 = vmul.f32 -1.442695, %v888_v61  ;;  %v1000_v10 = vunpack.c.l.bf16 %v998_v1 }
 0x22a   :  { %v834_v60 = vpop.f32.mrf.mxu0  ;;  %v1851_v13 = vpop.f32.mrf.mxu1 }
 0x22b   :  { %2064 = vpow2.f32 %v1675_v14 }
 0x236   :  { %v2063_v15 = vpop.eup %2062 }
 0x237   :  { %v881_v16 = vadd.f32 1.0, %v2063_v15 }
 0x238   :  { %v2065_v17 = vpop.eup %2064 }
 0x239   :  { %2066 = vrcp.f32 %v881_v16  ;;  %v892_v18 = vadd.f32 1.0, %v2065_v17 }
 0x23b   :  { %2068 = vrcp.f32 %v892_v18  ;;  %v2553_v18 = vld [vmem:[#allocation2 + $0x20] ss:$12 sps:$4 sm:$0xff]  }
 0x246   :  { %v2067_v11 = vpop.eup %2066 }
 0x247   :  { %v896_v23 = vmul.f32 %v2067_v11, %v895_v22 }
 0x248   :  { %v2069_v31 = vpop.eup %2068 }
 0x249   :  { %v898_v28 = vadd.f32 %v897_v25, %v896_v23  ;;  %v900_v37 = vsub.f32 1.0, %v2069_v31  ;;  %v902_v57 = vmul.f32 %v2069_v31, %v2468_v58  ;;  %v1010_v23 = vunpack.c.l.bf16 %v2553_v18 }
 0x24b   :  { %2070 = vtanh.f32 %v898_v28 }
 0x258   :  { %v2071_v53 = vpop.eup %2070 }
 0x259   :  { %v901_v56 = vmul.f32 %v2071_v53, %v900_v37 }
 0x25b   :  { %v2512_v59 = vadd.f32 %v902_v57, %v901_v56 }
 0x25d   :  { %v904_v9 = vpack.c.bf16 %v2512_v59, %v2512_v59 }
 0x25f   :  { %905 = vst [vmem:[#allocation10 + $0x4] sm:$0xf] %v904_v9  ;;  %941 = vmatmul.mubr.bf16.vlgmr.msra.gmra.mxu0 %v904_v9  ;;  %1869 = vmatmul.mubr.bf16.vlgmr.msra.gmra.mxu1 %v904_v9 }
 0x260   :  { %1022 = vmatpush1.bf16.msra.mxu0 %v2299_v26  ;;  %1873 = vmatpush3.bf16.msra.mxu1 %v2317_v34 }
 0x261   :  { %1023 = vmatprep.subr.bf16.mxu0 %v2302_v27  ;;  %1874 = vmatprep.subr.bf16.mxu1 %v2250_v35 }
 0x262   :  { %1053 = vmatprep.mubr.bf16.mxu0 %v2249_v0  ;;  %1888 = vmatprep.mubr.msk.bf16.mxu1 %vm2251_vm0, %v2250_v35 }
 0x264   :  { %1024 = vmatpush1.bf16.msra.mxu0 %v2305_v29  ;;  %1875 = vmatpush3.bf16.msra.mxu1 %v2328_v39 }
 0x265   :  { %1025 = vmatprep.subr.bf16.mxu0 %v2309_v30  ;;  %1876 = vmatprep.subr.bf16.mxu1 %v2250_v35 }
 0x268   :  { %1026 = vmatpush1.bf16.msra.mxu0 %v2312_v32  ;;  %1877 = vmatpush3.bf16.msra.mxu1 %v2338_v42 }
 0x269   :  { %1027 = vmatprep.subr.bf16.mxu0 %v2315_v33  ;;  %1878 = vmatprep.subr.bf16.mxu1 %v2250_v35 }
 0x26c   :  { %1028 = vmatpush1.bf16.msra.mxu0 %v2321_v36  ;;  %1879 = vmatpush3.bf16.msra.mxu1 %v2349_v46 }
 0x26d   :  { %1029 = vmatprep.subr.bf16.mxu0 %v2325_v38  ;;  %1880 = vmatprep.subr.bf16.mxu1 %v2250_v35 }
 0x270   :  { %1030 = vmatpush1.bf16.msra.mxu0 %v2332_v40  ;;  %1881 = vmatpush3.bf16.msra.mxu1 %v2361_v49 }
 0x271   :  { %1031 = vmatprep.subr.bf16.mxu0 %v2335_v41  ;;  %1882 = vmatprep.subr.bf16.mxu1 %v2250_v35 }
 0x274   :  { %1032 = vmatpush1.bf16.msra.mxu0 %v2342_v44  ;;  %1883 = vmatpush3.bf16.msra.mxu1 %v2370_v51 }
 0x275   :  { %1033 = vmatprep.subr.bf16.mxu0 %v2346_v45  ;;  %1884 = vmatprep.subr.bf16.mxu1 %v2250_v35 }
 0x278   :  { %1034 = vmatpush1.bf16.msra.mxu0 %v2355_v47  ;;  %1885 = vmatpush3.bf16.msra.mxu1 %v2376_v52 }
 0x279   :  { %1035 = vmatprep.subr.bf16.mxu0 %v2358_v48  ;;  %1886 = vmatprep.subr.bf16.mxu1 %v2250_v35 }
 0x27c   :  { %1036 = vmatpush1.bf16.msra.mxu0 %v2365_v50  ;;  %1887 = vmatpush3.bf16.msra.mxu1 %v2383_v54 }
 0x27d   :  { %1134 = vmatprep.subr.bf16.mxu0 %v2297_v24  ;;  %1892 = vmatprep.subr.bf16.mxu1 %v2250_v35 }
 0x31f   :  { %v942_v58 = vpop.f32.mrf.mxu0  ;;  %v983_v62 = vpop.f32.mrf.mxu1 }
 0x320   :  { %v990_v63 = vadd.f32 %v989_v21, %v942_v58  ;;  %v1008_v19 = vadd.f32 %v2462_v5, %v983_v62 }
 0x321   :  { %v944_v2 = vpop.f32.mrf.mxu0  ;;  %v1870_v3 = vpop.f32.mrf.mxu1 }
 0x322   :  { %v1676_v4 = vmul.f32 -1.442695, %v990_v63  ;;  %v1001_v13 = vadd.f32 %v1000_v10, %v944_v2  ;;  %v1111_v63 = vrot.slane %v2441_v55, 4 }
 0x323   :  { %v946_v7 = vpop.f32.mrf.mxu0  ;;  %v986_v8 = vpop.f32.mrf.mxu1 }
 0x324   :  { %2072 = vpow2.f32 %v1676_v4  ;;  %v1677_v61 = vmul.f32 -1.442695, %v1001_v13  ;;  %v1113_v8 = vunpack.c.l.bf16 %v1111_v63 }
 0x325   :  { %v947_v12 = vpop.f32.mrf.mxu0  ;;  %v1871_v60 = vpop.f32.mrf.mxu1 }
 0x326   :  { %2074 = vpow2.f32 %v1677_v61 }
 0x331   :  { %v2073_v14 = vpop.eup %2072 }
 0x332   :  { %v994_v15 = vadd.f32 1.0, %v2073_v14 }
 0x333   :  { %v2075_v16 = vpop.eup %2074 }
 0x334   :  { %2076 = vrcp.f32 %v994_v15  ;;  %v1005_v17 = vadd.f32 1.0, %v2075_v16 }
 0x336   :  { %2078 = vrcp.f32 %v1005_v17 }
 0x341   :  { %v2077_v22 = vpop.eup %2076 }
 0x342   :  { %v1009_v11 = vmul.f32 %v2077_v22, %v1008_v19  ;;  %v1123_v19 = vunpack.c.h.bf16 %v2553_v18 }
 0x343   :  { %v2079_v28 = vpop.eup %2078 }
 0x344   :  { %v1011_v25 = vadd.f32 %v1010_v23, %v1009_v11  ;;  %v1013_v31 = vsub.f32 1.0, %v2079_v28  ;;  %v1015_v56 = vmul.f32 %v2079_v28, %v2512_v59  ;;  %v1102_v59 = vunpack.c.l.bf16 %v2441_v55 }
 0x346   :  { %2080 = vtanh.f32 %v1011_v25 }
 0x353   :  { %v2081_v37 = vpop.eup %2080 }
 0x354   :  { %v1014_v53 = vmul.f32 %v2081_v37, %v1013_v31 }
 0x356   :  { %v2558_v57 = vadd.f32 %v1015_v56, %v1014_v53 }
 0x358   :  { %v1017_v9 = vpack.c.bf16 %v2558_v57, %v2558_v57 }
 0x35a   :  { %1018 = vst [vmem:[#allocation10 + $0x8] sm:$0xf] %v1017_v9  ;;  %1054 = vmatmul.mubr.bf16.vlgmr.msra.gmra.mxu0 %v1017_v9  ;;  %1889 = vmatmul.mubr.bf16.vlgmr.msra.gmra.mxu1 %v1017_v9 }
 0x35b   :  { %1135 = vmatpush1.bf16.msra.mxu0 %v2299_v26  ;;  %1893 = vmatpush3.bf16.msra.mxu1 %v2317_v34 }
 0x35c   :  { %1136 = vmatprep.subr.bf16.mxu0 %v2302_v27  ;;  %1894 = vmatprep.subr.bf16.mxu1 %v2250_v35 }
 0x35d   :  { %1166 = vmatprep.mubr.bf16.mxu0 %v2249_v0  ;;  %1908 = vmatprep.mubr.msk.bf16.mxu1 %vm2251_vm0, %v2250_v35 }
 0x35f   :  { %1137 = vmatpush1.bf16.msra.mxu0 %v2305_v29  ;;  %1895 = vmatpush3.bf16.msra.mxu1 %v2328_v39 }
 0x360   :  { %1138 = vmatprep.subr.bf16.mxu0 %v2309_v30  ;;  %1896 = vmatprep.subr.bf16.mxu1 %v2250_v35 }
 0x363   :  { %1139 = vmatpush1.bf16.msra.mxu0 %v2312_v32  ;;  %1897 = vmatpush3.bf16.msra.mxu1 %v2338_v42 }
 0x364   :  { %1140 = vmatprep.subr.bf16.mxu0 %v2315_v33  ;;  %1898 = vmatprep.subr.bf16.mxu1 %v2250_v35 }
 0x367   :  { %1141 = vmatpush1.bf16.msra.mxu0 %v2321_v36  ;;  %1899 = vmatpush3.bf16.msra.mxu1 %v2349_v46 }
 0x368   :  { %1142 = vmatprep.subr.bf16.mxu0 %v2325_v38  ;;  %1900 = vmatprep.subr.bf16.mxu1 %v2250_v35 }
 0x36b   :  { %1143 = vmatpush1.bf16.msra.mxu0 %v2332_v40  ;;  %1901 = vmatpush3.bf16.msra.mxu1 %v2361_v49 }
 0x36c   :  { %1144 = vmatprep.subr.bf16.mxu0 %v2335_v41  ;;  %1902 = vmatprep.subr.bf16.mxu1 %v2250_v35 }
 0x36f   :  { %1145 = vmatpush1.bf16.msra.mxu0 %v2342_v44  ;;  %1903 = vmatpush3.bf16.msra.mxu1 %v2370_v51 }
 0x370   :  { %1146 = vmatprep.subr.bf16.mxu0 %v2346_v45  ;;  %1904 = vmatprep.subr.bf16.mxu1 %v2250_v35 }
 0x373   :  { %1147 = vmatpush1.bf16.msra.mxu0 %v2355_v47  ;;  %1905 = vmatpush3.bf16.msra.mxu1 %v2376_v52 }
 0x374   :  { %1148 = vmatprep.subr.bf16.mxu0 %v2358_v48  ;;  %1906 = vmatprep.subr.bf16.mxu1 %v2250_v35 }
 0x377   :  { %1149 = vmatpush1.bf16.msra.mxu0 %v2365_v50  ;;  %1907 = vmatpush3.bf16.msra.mxu1 %v2383_v54 }
 0x378   :  { %1247 = vmatprep.subr.bf16.mxu0 %v2297_v24  ;;  %1912 = vmatprep.subr.bf16.mxu1 %v2250_v35 }
 0x41a   :  { %v1055_v21 = vpop.f32.mrf.mxu0  ;;  %v1096_v58 = vpop.f32.mrf.mxu1 }
 0x41b   :  { %v1103_v62 = vadd.f32 %v1102_v59, %v1055_v21  ;;  %v1121_v16 = vadd.f32 %v2462_v5, %v1096_v58  ;;  %v2645_v21 = vld [vmem:[#allocation2 + $0x38] ss:$12 sps:$4 sm:$0xff]  }
 0x41c   :  { %v1057_v1 = vpop.f32.mrf.mxu0  ;;  %v1890_v2 = vpop.f32.mrf.mxu1  ;;  %v1236_v63 = vunpack.c.l.bf16 %v2645_v21 }
 0x41d   :  { %v1678_v3 = vmul.f32 -1.442695, %v1103_v62  ;;  %v1114_v60 = vadd.f32 %v1113_v8, %v1057_v1 }
 0x41e   :  { %v1059_v4 = vpop.f32.mrf.mxu0  ;;  %v1099_v7 = vpop.f32.mrf.mxu1 }
 0x41f   :  { %2082 = vpow2.f32 %v1678_v3  ;;  %v1679_v24 = vmul.f32 -1.442695, %v1114_v60  ;;  %v2654_v60 = vld [vmem:[#allocation9 + $0xa8] ss:$12 sps:$4 sm:$0xff]  }
 0x420   :  { %v1060_v10 = vpop.f32.mrf.mxu0  ;;  %v1891_v12 = vpop.f32.mrf.mxu1 }
 0x421   :  { %2084 = vpow2.f32 %v1679_v24  ;;  %v2657_v24 = vld [vmem:[#allocation9 + $0xb0] ss:$12 sps:$4 sm:$0xff]  }
 0x42c   :  { %v2083_v13 = vpop.eup %2082 }
 0x42d   :  { %v1107_v61 = vadd.f32 1.0, %v2083_v13  ;;  %v2660_v13 = vld [vmem:[#allocation9 + $0x94] ss:$12 sps:$4 sm:$0xff]  }
 0x42e   :  { %v2085_v14 = vpop.eup %2084 }
 0x42f   :  { %2086 = vrcp.f32 %v1107_v61  ;;  %v1118_v15 = vadd.f32 1.0, %v2085_v14  ;;  %v2667_v61 = vld [vmem:[#allocation9 + $0x90] ss:$12 sps:$4 sm:$0xff]   ;;  %v2670_v14 = vld [vmem:[#allocation9 + $0x98] ss:$12 sps:$4 sm:$0xff]  }
 0x431   :  { %2088 = vrcp.f32 %v1118_v15  ;;  %v2673_v15 = vld [vmem:[#allocation9 + $0x7c] ss:$12 sps:$4 sm:$0xff]  }
 0x43c   :  { %v2087_v55 = vpop.eup %2086 }
 0x43d   :  { %v1122_v17 = vmul.f32 %v2087_v55, %v1121_v16  ;;  %v2677_v16 = vld [vmem:[#allocation9 + $0x78] ss:$12 sps:$4 sm:$0xff]   ;;  %v2680_v55 = vld [vmem:[#allocation9 + $0x80] ss:$12 sps:$4 sm:$0xff]  }
 0x43e   :  { %v2089_v11 = vpop.eup %2088 }
 0x43f   :  { %v1124_v22 = vadd.f32 %v1123_v19, %v1122_v17  ;;  %v1126_v23 = vsub.f32 1.0, %v2089_v11  ;;  %v1128_v31 = vmul.f32 %v2089_v11, %v2558_v57  ;;  %v2683_v17 = vld [vmem:[#allocation9 + $0x64] ss:$12 sps:$4 sm:$0xff]   ;;  %v2687_v19 = vld [vmem:[#allocation9 + $0x60] ss:$12 sps:$4 sm:$0xff]  }
 0x440   :  { %v2695_v11 = vld [vmem:[#allocation9 + $0x48] ss:$12 sps:$4 sm:$0xff]  }
 0x441   :  { %2090 = vtanh.f32 %v1124_v22  ;;  %v2691_v22 = vld [vmem:[#allocation9 + $0x4c] ss:$12 sps:$4 sm:$0xff]  }
 0x44e   :  { %v2091_v25 = vpop.eup %2090 }
 0x44f   :  { %v1127_v28 = vmul.f32 %v2091_v25, %v1126_v23  ;;  %v2699_v23 = vld [vmem:[#allocation9 + $0x34] ss:$12 sps:$4 sm:$0xff]   ;;  %v2703_v25 = vld [vmem:[#allocation9 + $0x30] ss:$12 sps:$4 sm:$0xff]  }
 0x451   :  { %v2602_v37 = vadd.f32 %v1128_v31, %v1127_v28 }
 0x453   :  { %v1130_v53 = vpack.c.bf16 %v2602_v37, %v2602_v37 }
 0x455   :  { %1131 = vst [vmem:[#allocation10 + $0xc] sm:$0xf] %v1130_v53  ;;  %1167 = vmatmul.mubr.bf16.vlgmr.msra.gmra.mxu0 %v1130_v53  ;;  %1909 = vmatmul.mubr.bf16.vlgmr.msra.gmra.mxu1 %v1130_v53 }
 0x456   :  { %1248 = vmatpush1.bf16.msra.mxu0 %v2299_v26  ;;  %1913 = vmatpush3.bf16.msra.mxu1 %v2317_v34  ;;  %v2639_v26 = vld [vmem:[#allocation9 + $0xac] ss:$12 sps:$4 sm:$0xff]  }
 0x457   :  { %1249 = vmatprep.subr.bf16.mxu0 %v2302_v27  ;;  %1914 = vmatprep.subr.bf16.mxu1 %v2250_v35  ;;  %v1215_v27 = vunpack.c.l.bf16 %v2445_v6 }
 0x458   :  { %1279 = vmatprep.mubr.bf16.mxu0 %v2249_v0  ;;  %1928 = vmatprep.mubr.msk.bf16.mxu1 %vm2251_vm0, %v2250_v35 }
 0x45a   :  { %1250 = vmatpush1.bf16.msra.mxu0 %v2305_v29  ;;  %1915 = vmatpush3.bf16.msra.mxu1 %v2328_v39 }
 0x45b   :  { %1251 = vmatprep.subr.bf16.mxu0 %v2309_v30  ;;  %1916 = vmatprep.subr.bf16.mxu1 %v2250_v35 }
 0x45e   :  { %1252 = vmatpush1.bf16.msra.mxu0 %v2312_v32  ;;  %1917 = vmatpush3.bf16.msra.mxu1 %v2338_v42 }
 0x45f   :  { %1253 = vmatprep.subr.bf16.mxu0 %v2315_v33  ;;  %1918 = vmatprep.subr.bf16.mxu1 %v2250_v35  ;;  %v1224_v33 = vrot.slane %v2445_v6, 4 }
 0x462   :  { %1254 = vmatpush1.bf16.msra.mxu0 %v2321_v36  ;;  %1919 = vmatpush3.bf16.msra.mxu1 %v2349_v46 }
 0x463   :  { %1255 = vmatprep.subr.bf16.mxu0 %v2325_v38  ;;  %1920 = vmatprep.subr.bf16.mxu1 %v2250_v35 }
 0x466   :  { %1256 = vmatpush1.bf16.msra.mxu0 %v2332_v40  ;;  %1921 = vmatpush3.bf16.msra.mxu1 %v2361_v49 }
 0x467   :  { %1257 = vmatprep.subr.bf16.mxu0 %v2335_v41  ;;  %1922 = vmatprep.subr.bf16.mxu1 %v2250_v35  ;;  %v1226_v41 = vunpack.c.l.bf16 %v1224_v33 }
 0x46a   :  { %1258 = vmatpush1.bf16.msra.mxu0 %v2342_v44  ;;  %1923 = vmatpush3.bf16.msra.mxu1 %v2370_v51 }
 0x46b   :  { %1259 = vmatprep.subr.bf16.mxu0 %v2346_v45  ;;  %1924 = vmatprep.subr.bf16.mxu1 %v2250_v35 }
 0x46e   :  { %1260 = vmatpush1.bf16.msra.mxu0 %v2355_v47  ;;  %1925 = vmatpush3.bf16.msra.mxu1 %v2376_v52 }
 0x46f   :  { %1261 = vmatprep.subr.bf16.mxu0 %v2358_v48  ;;  %1926 = vmatprep.subr.bf16.mxu1 %v2250_v35 }
 0x472   :  { %1262 = vmatpush1.bf16.msra.mxu0 %v2365_v50  ;;  %1927 = vmatpush3.bf16.msra.mxu1 %v2383_v54 }
 0x473   :  { %1360 = vmatprep.subr.bf16.mxu0 %v2639_v26  ;;  %1932 = vmatprep.subr.bf16.mxu1 %v2250_v35 }
 0x515   :  { %v1168_v29 = vpop.f32.mrf.mxu0  ;;  %v1209_v30 = vpop.f32.mrf.mxu1 }
 0x516   :  { %v1216_v32 = vadd.f32 %v1215_v27, %v1168_v29  ;;  %v1234_v6 = vadd.f32 %v2462_v5, %v1209_v30 }
 0x517   :  { %v1170_v34 = vpop.f32.mrf.mxu0  ;;  %v1910_v36 = vpop.f32.mrf.mxu1 }
 0x518   :  { %v1680_v38 = vmul.f32 -1.442695, %v1216_v32  ;;  %v1227_v45 = vadd.f32 %v1226_v41, %v1170_v34 }
 0x519   :  { %v1172_v39 = vpop.f32.mrf.mxu0  ;;  %v1212_v40 = vpop.f32.mrf.mxu1 }
 0x51a   :  { %2092 = vpow2.f32 %v1680_v38  ;;  %v1681_v18 = vmul.f32 -1.442695, %v1227_v45  ;;  %v1349_v40 = vunpack.c.h.bf16 %v2645_v21  ;;  %v2150_v21 = vld [vmem:[#allocation9 + $0x38] ss:$12 sps:$4 sm:$0xff]  }
 0x51b   :  { %v1173_v42 = vpop.f32.mrf.mxu0  ;;  %v1911_v44 = vpop.f32.mrf.mxu1 }
 0x51c   :  { %2094 = vpow2.f32 %v1681_v18 }
 0x527   :  { %v2093_v56 = vpop.eup %2092 }
 0x528   :  { %v1220_v57 = vadd.f32 1.0, %v2093_v56 }
 0x529   :  { %v2095_v9 = vpop.eup %2094 }
 0x52a   :  { %2096 = vrcp.f32 %v1220_v57  ;;  %v1231_v59 = vadd.f32 1.0, %v2095_v9 }
 0x52c   :  { %2098 = vrcp.f32 %v1231_v59  ;;  %v2149_v59 = vld [vmem:[#allocation9 + $0x50] ss:$12 sps:$4 sm:$0xff]  }
 0x537   :  { %v2097_v58 = vpop.eup %2096 }
 0x538   :  { %v1235_v62 = vmul.f32 %v2097_v58, %v1234_v6  ;;  %v2151_v6 = vld [vmem:[#allocation9 + $0x18] ss:$12 sps:$4 sm:$0xff]   ;;  %v2152_v58 = vld [vmem:[#allocation9 + $0x20] ss:$12 sps:$4 sm:$0xff]  }
 0x539   :  { %v2099_v2 = vpop.eup %2098 }
 0x53a   :  { %v1237_v1 = vadd.f32 %v1236_v63, %v1235_v62  ;;  %v1239_v3 = vsub.f32 1.0, %v2099_v2  ;;  %v1241_v8 = vmul.f32 %v2099_v2, %v2602_v37  ;;  %v2153_v62 = vld [vmem:[#allocation9 + $0x4] ss:$12 sps:$4 sm:$0xff]   ;;  %v2154_v63 = vld [vmem:[#allocation9] ss:$12 sps:$4 sm:$0xff]   ;;  %v1441_v2 = vunpack.c.l.bf16 %v2453_v43 }
 0x53c   :  { %2100 = vtanh.f32 %v1237_v1  ;;  %v2155_v1 = vld [vmem:[#allocation9 + $0x8] ss:$12 sps:$4 sm:$0xff]  }
 0x549   :  { %v2101_v4 = vpop.eup %2100 }
 0x54a   :  { %v1240_v7 = vmul.f32 %v2101_v4, %v1239_v3 }
 0x54c   :  { %v2650_v10 = vadd.f32 %v1241_v8, %v1240_v7  ;;  %v1450_v8 = vrot.slane %v2453_v43, 4 }
 0x54e   :  { %v1243_v12 = vpack.c.bf16 %v2650_v10, %v2650_v10 }
 0x550   :  { %1244 = vst [vmem:[#allocation10 + $0x10] sm:$0xf] %v1243_v12  ;;  %1280 = vmatmul.mubr.bf16.vlgmr.msra.gmra.mxu0 %v1243_v12  ;;  %1929 = vmatmul.mubr.bf16.vlgmr.msra.gmra.mxu1 %v1243_v12 }
 0x551   :  { %1361 = vmatpush1.bf16.msra.mxu0 %v2654_v60  ;;  %1933 = vmatpush3.bf16.msra.mxu1 %v2657_v24 }
 0x552   :  { %1362 = vmatprep.subr.bf16.mxu0 %v2660_v13  ;;  %1934 = vmatprep.subr.bf16.mxu1 %v2250_v35 }
 0x553   :  { %1392 = vmatprep.mubr.bf16.mxu0 %v2249_v0  ;;  %1948 = vmatprep.mubr.msk.bf16.mxu1 %vm2251_vm0, %v2250_v35 }
 0x555   :  { %1363 = vmatpush1.bf16.msra.mxu0 %v2667_v61  ;;  %1935 = vmatpush3.bf16.msra.mxu1 %v2670_v14 }
 0x556   :  { %1364 = vmatprep.subr.bf16.mxu0 %v2673_v15  ;;  %1936 = vmatprep.subr.bf16.mxu1 %v2250_v35 }
 0x559   :  { %1365 = vmatpush1.bf16.msra.mxu0 %v2677_v16  ;;  %1937 = vmatpush3.bf16.msra.mxu1 %v2680_v55 }
 0x55a   :  { %1366 = vmatprep.subr.bf16.mxu0 %v2683_v17  ;;  %1938 = vmatprep.subr.bf16.mxu1 %v2250_v35 }
 0x55d   :  { %1367 = vmatpush1.bf16.msra.mxu0 %v2687_v19  ;;  %1939 = vmatpush3.bf16.msra.mxu1 %v2349_v46  ;;  %v2707_v46 = vld [vmem:[#allocation9 + $0x1c] ss:$12 sps:$4 sm:$0xff]  }
 0x55e   :  { %1368 = vmatprep.subr.bf16.mxu0 %v2691_v22  ;;  %1940 = vmatprep.subr.bf16.mxu1 %v2250_v35 }
 0x561   :  { %1369 = vmatpush1.bf16.msra.mxu0 %v2695_v11  ;;  %1941 = vmatpush3.bf16.msra.mxu1 %v2361_v49  ;;  %v1328_v49 = vunpack.c.l.bf16 %v2449_v20 }
 0x562   :  { %1370 = vmatprep.subr.bf16.mxu0 %v2699_v23  ;;  %1942 = vmatprep.subr.bf16.mxu1 %v2250_v35 }
 0x565   :  { %1371 = vmatpush1.bf16.msra.mxu0 %v2703_v25  ;;  %1943 = vmatpush3.bf16.msra.mxu1 %v2370_v51 }
 0x566   :  { %1372 = vmatprep.subr.bf16.mxu0 %v2707_v46  ;;  %1944 = vmatprep.subr.bf16.mxu1 %v2250_v35 }
 0x569   :  { %1373 = vmatpush1.bf16.msra.mxu0 %v2355_v47  ;;  %1945 = vmatpush3.bf16.msra.mxu1 %v2376_v52  ;;  %v1337_v47 = vrot.slane %v2449_v20, 4 }
 0x56a   :  { %1374 = vmatprep.subr.bf16.mxu0 %v2358_v48  ;;  %1946 = vmatprep.subr.bf16.mxu1 %v2250_v35 }
 0x56d   :  { %1375 = vmatpush1.bf16.msra.mxu0 %v2365_v50  ;;  %1947 = vmatpush3.bf16.msra.mxu1 %v2383_v54  ;;  %v1339_v50 = vunpack.c.l.bf16 %v1337_v47 }
 0x56e   :  { %1473 = vmatprep.subr.bf16.mxu0 %v2639_v26  ;;  %1952 = vmatprep.subr.bf16.mxu1 %v2250_v35 }
 0x610   :  { %v1281_v51 = vpop.f32.mrf.mxu0  ;;  %v1322_v28 = vpop.f32.mrf.mxu1 }
 0x611   :  { %v1329_v31 = vadd.f32 %v1328_v49, %v1281_v51  ;;  %v1347_v38 = vadd.f32 %v2462_v5, %v1322_v28 }
 0x612   :  { %v1283_v52 = vpop.f32.mrf.mxu0  ;;  %v1930_v37 = vpop.f32.mrf.mxu1 }
 0x613   :  { %v1682_v48 = vmul.f32 -1.442695, %v1329_v31  ;;  %v1340_v30 = vadd.f32 %v1339_v50, %v1283_v52 }
 0x614   :  { %v1285_v53 = vpop.f32.mrf.mxu0  ;;  %v1325_v27 = vpop.f32.mrf.mxu1 }
 0x615   :  { %2102 = vpow2.f32 %v1682_v48  ;;  %v1683_v26 = vmul.f32 -1.442695, %v1340_v30  ;;  %v1471_v53 = vld [vmem:[#allocation2 + $0x54] sm:$0xff] }
 0x616   :  { %v1286_v29 = vpop.f32.mrf.mxu0  ;;  %v1931_v54 = vpop.f32.mrf.mxu1  ;;  %v1554_v27 = vunpack.c.l.bf16 %v1471_v53  ;;  %v1563_v30 = vrot.slane %v1471_v53, 4 }
 0x617   :  { %2104 = vpow2.f32 %v1683_v26 }
 0x622   :  { %v2103_v32 = vpop.eup %2102 }
 0x623   :  { %v1333_v33 = vadd.f32 1.0, %v2103_v32 }
 0x624   :  { %v2105_v34 = vpop.eup %2104 }
 0x625   :  { %2106 = vrcp.f32 %v1333_v33  ;;  %v1344_v36 = vadd.f32 1.0, %v2105_v34 }
 0x627   :  { %2108 = vrcp.f32 %v1344_v36 }
 0x632   :  { %v2107_v20 = vpop.eup %2106 }
 0x633   :  { %v1348_v39 = vmul.f32 %v2107_v20, %v1347_v38  ;;  %v1565_v38 = vunpack.c.l.bf16 %v1563_v30 }
 0x634   :  { %v2109_v42 = vpop.eup %2108 }
 0x635   :  { %v1350_v41 = vadd.f32 %v1349_v40, %v1348_v39  ;;  %v1352_v44 = vsub.f32 1.0, %v2109_v42  ;;  %v1354_v56 = vmul.f32 %v2109_v42, %v2650_v10 }
 0x637   :  { %2110 = vtanh.f32 %v1350_v41 }
 0x644   :  { %v2111_v45 = vpop.eup %2110 }
 0x645   :  { %v1353_v18 = vmul.f32 %v2111_v45, %v1352_v44 }
 0x647   :  { %v2724_v57 = vadd.f32 %v1354_v56, %v1353_v18 }
 0x649   :  { %v1356_v9 = vpack.c.bf16 %v2724_v57, %v2724_v57 }
 0x64b   :  { %1357 = vst [vmem:[#allocation10 + $0x14] sm:$0xf] %v1356_v9  ;;  %1393 = vmatmul.mubr.bf16.vlgmr.msra.gmra.mxu0 %v1356_v9  ;;  %1949 = vmatmul.mubr.bf16.vlgmr.msra.gmra.mxu1 %v1356_v9 }
 0x64c   :  { %1474 = vmatpush1.bf16.msra.mxu0 %v2654_v60  ;;  %1953 = vmatpush3.bf16.msra.mxu1 %v2657_v24 }
 0x64d   :  { %1475 = vmatprep.subr.bf16.mxu0 %v2660_v13  ;;  %1954 = vmatprep.subr.bf16.mxu1 %v2250_v35 }
 0x64e   :  { %1505 = vmatprep.mubr.bf16.mxu0 %v2249_v0  ;;  %1968 = vmatprep.mubr.msk.bf16.mxu1 %vm2251_vm0, %v2250_v35  ;;  %v2148_v0 = vld [vmem:[#allocation9 + $0x68] ss:$12 sps:$4 sm:$0xff]  }
 0x650   :  { %1476 = vmatpush1.bf16.msra.mxu0 %v2667_v61  ;;  %1955 = vmatpush3.bf16.msra.mxu1 %v2670_v14  ;;  %v1452_v61 = vunpack.c.l.bf16 %v1450_v8 }
 0x651   :  { %1477 = vmatprep.subr.bf16.mxu0 %v2673_v15  ;;  %1956 = vmatprep.subr.bf16.mxu1 %v2250_v35 }
 0x654   :  { %1478 = vmatpush1.bf16.msra.mxu0 %v2677_v16  ;;  %1957 = vmatpush3.bf16.msra.mxu1 %v2680_v55 }
 0x655   :  { %1479 = vmatprep.subr.bf16.mxu0 %v2683_v17  ;;  %1958 = vmatprep.subr.bf16.mxu1 %v2250_v35 }
 0x658   :  { %1480 = vmatpush1.bf16.msra.mxu0 %v2687_v19  ;;  %1959 = vmatpush3.bf16.msra.mxu1 %v2148_v0 }
 0x659   :  { %1481 = vmatprep.subr.bf16.mxu0 %v2691_v22  ;;  %1960 = vmatprep.subr.bf16.mxu1 %v2250_v35 }
 0x65c   :  { %1482 = vmatpush1.bf16.msra.mxu0 %v2695_v11  ;;  %1961 = vmatpush3.bf16.msra.mxu1 %v2149_v59  ;;  %v1359_v11 = vld [vmem:[#allocation2 + $0x50] ss:$12 sps:$4 sm:$0xff]  }
 0x65d   :  { %1483 = vmatprep.subr.bf16.mxu0 %v2699_v23  ;;  %1962 = vmatprep.subr.bf16.mxu1 %v2250_v35  ;;  %v1575_v0 = vunpack.c.h.bf16 %v1359_v11 }
 0x660   :  { %1484 = vmatpush1.bf16.msra.mxu0 %v2703_v25  ;;  %1963 = vmatpush3.bf16.msra.mxu1 %v2150_v21 }
 0x661   :  { %1485 = vmatprep.subr.bf16.mxu0 %v2707_v46  ;;  %1964 = vmatprep.subr.bf16.mxu1 %v2250_v35  ;;  %v1462_v46 = vunpack.c.l.bf16 %v1359_v11 }
 0x664   :  { %1486 = vmatpush1.bf16.msra.mxu0 %v2151_v6  ;;  %1965 = vmatpush3.bf16.msra.mxu1 %v2152_v58 }
 0x665   :  { %1487 = vmatprep.subr.bf16.mxu0 %v2153_v62  ;;  %1966 = vmatprep.subr.bf16.mxu1 %v2250_v35 }
 0x668   :  { %1488 = vmatpush1.bf16.msra.mxu0 %v2154_v63  ;;  %1967 = vmatpush3.bf16.msra.mxu1 %v2155_v1 }
 0x70b   :  { %v1394_v3 = vpop.f32.mrf.mxu0  ;;  %v1435_v4 = vpop.f32.mrf.mxu1 }
 0x70c   :  { %v1442_v7 = vadd.f32 %v1441_v2, %v1394_v3  ;;  %v1460_v43 = vadd.f32 %v2462_v5, %v1435_v4 }
 0x70d   :  { %v1396_v10 = vpop.f32.mrf.mxu0  ;;  %v1950_v12 = vpop.f32.mrf.mxu1 }
 0x70e   :  { %v1684_v60 = vmul.f32 -1.442695, %v1442_v7  ;;  %v1453_v15 = vadd.f32 %v1452_v61, %v1396_v10 }
 0x70f   :  { %v1398_v24 = vpop.f32.mrf.mxu0  ;;  %v1438_v13 = vpop.f32.mrf.mxu1 }
 0x710   :  { %2112 = vpow2.f32 %v1684_v60  ;;  %v1685_v16 = vmul.f32 -1.442695, %v1453_v15 }
 0x711   :  { %v1399_v14 = vpop.f32.mrf.mxu0  ;;  %v1951_v35 = vpop.f32.mrf.mxu1 }
 0x712   :  { %2114 = vpow2.f32 %v1685_v16 }
 0x71d   :  { %v2113_v55 = vpop.eup %2112 }
 0x71e   :  { %v1446_v17 = vadd.f32 1.0, %v2113_v55 }
 0x71f   :  { %v2115_v19 = vpop.eup %2114 }
 0x720   :  { %2116 = vrcp.f32 %v1446_v17  ;;  %v1457_v22 = vadd.f32 1.0, %v2115_v19 }
 0x722   :  { %2118 = vrcp.f32 %v1457_v22 }
 0x72d   :  { %v2117_v23 = vpop.eup %2116 }
 0x72e   :  { %v1461_v25 = vmul.f32 %v2117_v23, %v1460_v43 }
 0x72f   :  { %v2119_v51 = vpop.eup %2118 }
 0x730   :  { %v1463_v49 = vadd.f32 %v1462_v46, %v1461_v25  ;;  %v1465_v28 = vsub.f32 1.0, %v2119_v51  ;;  %v1467_v52 = vmul.f32 %v2119_v51, %v2724_v57 }
 0x732   :  { %2120 = vtanh.f32 %v1463_v49 }
 0x73f   :  { %v2121_v31 = vpop.eup %2120 }
 0x740   :  { %v1466_v47 = vmul.f32 %v2121_v31, %v1465_v28 }
 0x742   :  { %v1468_v37 = vadd.f32 %v1467_v52, %v1466_v47 }
 0x744   :  { %v1469_v48 = vpack.c.bf16 %v1468_v37, %v1468_v37 }
 0x746   :  { %1470 = vst [vmem:[#allocation10 + $0x18] sm:$0xf] %v1469_v48  ;;  %1506 = vmatmul.mubr.bf16.vlgmr.msra.gmra.mxu0 %v1469_v48  ;;  %1969 = vmatmul.mubr.bf16.vlgmr.msra.gmra.mxu1 %v1469_v48 }
 0x806   :  { %v1507_v50 = vpop.f32.mrf.mxu0  ;;  %v1548_v29 = vpop.f32.mrf.mxu1 }
 0x807   :  { %v1555_v54 = vadd.f32 %v1554_v27, %v1507_v50  ;;  %v1573_v56 = vadd.f32 %v2462_v5, %v1548_v29 }
 0x808   :  { %v1509_v26 = vpop.f32.mrf.mxu0  ;;  %v1970_v32 = vpop.f32.mrf.mxu1 }
 0x809   :  { %v1686_v33 = vmul.f32 -1.442695, %v1555_v54  ;;  %v1566_v40 = vadd.f32 %v1565_v38, %v1509_v26 }
 0x80a   :  { %v1511_v34 = vpop.f32.mrf.mxu0  ;;  %v1551_v36 = vpop.f32.mrf.mxu1 }
 0x80b   :  { %2122 = vpow2.f32 %v1686_v33  ;;  %v1687_v41 = vmul.f32 -1.442695, %v1566_v40 }
 0x80c   :  { %v1512_v20 = vpop.f32.mrf.mxu0  ;;  %v1971_v39 = vpop.f32.mrf.mxu1 }
 0x80d   :  { %2124 = vpow2.f32 %v1687_v41 }
 0x818   :  { %v2123_v42 = vpop.eup %2122 }
 0x819   :  { %v1559_v44 = vadd.f32 1.0, %v2123_v42 }
 0x81a   :  { %v2125_v45 = vpop.eup %2124 }
 0x81b   :  { %2126 = vrcp.f32 %v1559_v44  ;;  %v1570_v18 = vadd.f32 1.0, %v2125_v45 }
 0x81d   :  { %2128 = vrcp.f32 %v1570_v18 }
 0x828   :  { %v2127_v57 = vpop.eup %2126 }
 0x829   :  { %v1574_v9 = vmul.f32 %v2127_v57, %v1573_v56 }
 0x82a   :  { %v2129_v21 = vpop.eup %2128 }
 0x82b   :  { %v1576_v59 = vadd.f32 %v1575_v0, %v1574_v9  ;;  %v1578_v6 = vsub.f32 1.0, %v2129_v21  ;;  %v1580_v63 = vmul.f32 %v2129_v21, %v1468_v37 }
 0x82d   :  { %2130 = vtanh.f32 %v1576_v59 }
 0x83a   :  { %v2131_v58 = vpop.eup %2130 }
 0x83b   :  { %v1579_v62 = vmul.f32 %v2131_v58, %v1578_v6 }
 0x83d   :  { %v1581_v1 = vadd.f32 %v1580_v63, %v1579_v62 }
 0x83f   :  { %v1582_v2 = vpack.c.bf16 %v1581_v1, %v1581_v1 }
 0x841   :  { %1583 = vst [vmem:[#allocation10 + $0x1c] sm:$0xf] %v1582_v2 }
 0x842   :  { %2227 = shalt.err (!%p2224_p5)
}
 0x843   :  { %1596 = dma.vmem_to_hbm [thread:$0]  %s1591_s12, 512, %s2769_s5, [#allocation6], %s2246_s28, %s2246_s28, %s2247_s29  }
 0x844   :  { %2240 = dma.done.wait [#allocation6], 512  }
 0x845   :  { %2241 = vsyncadd [#allocation6], 4294966784 }
 0x846   :  { %1600 = vsyncpa [#allocation5], 1 }
 0x847   :  { %1601 = vsyncpa [#allocation8], 1 }
 0x848   :  { %1602 = vsyncpa [#allocation6], 1 }

</bundles_post_ra>
